<compile_context>
chip_gen: v7x
topology: tpu7x:2x2x1
jax: 0.10.0
libtpu: 0.0.40
codegen_flags: <defaults>
</compile_context>

<pallas_src>
import jax
import jax.numpy as jnp
from jax.experimental import pallas as pl
from jax.experimental.pallas import tpu as pltpu


D_IN = 28 * 28          # 784 — kept unpadded (full-dim BlockSpec; Mosaic pads lanes internally)
H1 = 512
H2_PAD = 128            # 64  -> 128 lane-dense hidden
OUT_PAD = 128           # 10  -> 128 lane-dense logits (sliced to 10 outside the kernel)
VMEM_LIMIT_BYTES = 48 * 1024 * 1024   # explicit: < v7x 64 MiB physical, << v5e/v6e 128 MiB


def _round_up(x, m):
    return ((x + m - 1) // m) * m


def _choose_batch_tiling(B, compute_dtype):
    """Pick (TB, B_pad, n_tiles).

    - padding waste < one tile (no round_up(B, TB) blow-up),
    - >= 2 tiles (and an even count) when B >= 16 so the batch axis shards across both
      v7x TensorCores and the x DMA double-buffers behind compute,
    - per-dtype tile cap: bf16 tiles are cheap in VMEM, f32 kept at <= 1024.
    """
    max_tb = 2048 if jnp.dtype(compute_dtype) == jnp.dtype(jnp.bfloat16) else 1024
    min_tiles = 2 if B >= 16 else 1
    n_tiles = max(min_tiles, pl.cdiv(B, max_tb))
    if n_tiles > 1 and n_tiles % 2:
        n_tiles += 1                       # even tile count -> balanced across 2 TCs
    tb = _round_up(pl.cdiv(B, n_tiles), 8)
    return tb, tb * n_tiles, n_tiles


def _mlp_kernel(x_ref, w1_ref, b1_ref, w2_ref, b2_ref, w3_ref, b3_ref, o_ref):
    cdt = w1_ref.dtype                      # compute dtype (MXU operands + activations)
    x = x_ref[...].astype(cdt)              # cast f32 rows -> compute dtype in-kernel

    # fc1 + sigmoid  (sigmoid as 0.5*tanh(0.5*x)+0.5 -> single EUP op per element)
    h = jnp.dot(x, w1_ref[...], preferred_element_type=jnp.float32)
    h = (h + b1_ref[...]).astype(cdt)
    h = jnp.tanh(0.5 * h) * 0.5 + 0.5

    # fc2 + sigmoid  (zero pad cols of w2/b2 -> pre-act 0 -> 0.5, blocked by w3's zero K-rows)
    h = jnp.dot(h, w2_ref[...], preferred_element_type=jnp.float32)
    h = (h + b2_ref[...]).astype(cdt)
    h = jnp.tanh(0.5 * h) * 0.5 + 0.5

    # fc3 logits (no activation); w3 has zero K-rows AND zero N-cols -> exact.
    out = jnp.dot(h, w3_ref[...], preferred_element_type=jnp.float32)
    o_ref[...] = (out + b3_ref[...]).astype(o_ref.dtype)


def prepare_params(params, compute_dtype=jnp.bfloat16):
    """One-time pad + cast of weights/biases (hoisted out of the per-call forward path).

    params: w1 (784,512), b1 (512,), w2 (512,64), b2 (64,), w3 (64,10), b3 (10,)
            with weights already transposed to (in_features, out_features).
    """
    f32 = jnp.float32
    w1 = params["w1"].astype(f32).astype(compute_dtype)                               # (784, 512)
    w2 = jnp.pad(params["w2"].astype(f32), ((0, 0), (0, H2_PAD - 64))).astype(compute_dtype)
    w3 = jnp.pad(params["w3"].astype(f32),
                 ((0, H2_PAD - 64), (0, OUT_PAD - 10))).astype(compute_dtype)         # zero K-rows & N-cols
    b1 = params["b1"].astype(f32).reshape(1, -1)                                      # (1, 512)
    b2 = jnp.pad(params["b2"].astype(f32).reshape(1, -1), ((0, 0), (0, H2_PAD - 64))) # (1, 128)
    b3 = jnp.pad(params["b3"].astype(f32).reshape(1, -1), ((0, 0), (0, OUT_PAD - 10)))# (1, 128)
    return {"w1": w1, "b1": b1, "w2": w2, "b2": b2, "w3": w3, "b3": b3}


def fc_hdrm_net_forward(x, prepared):
    """Forward pass of FC_HDRM_Net.

    x: (B, 1, 28, 28) or (B, 784) float
    prepared: output of prepare_params() (compute dtype inferred from prepared['w1'].dtype)
    returns: (B, 10) float32 logits
    """
    w1, b1 = prepared["w1"], prepared["b1"]
    w2, b2 = prepared["w2"], prepared["b2"]
    w3, b3 = prepared["w3"], prepared["b3"]
    compute_dtype = w1.dtype
    out_dtype = w1.dtype      # bf16 output on the bf16 path halves output HBM traffic

    x2d = x.reshape(-1, D_IN).astype(jnp.float32)   # no lane pad / no pre-cast of x
    B = x2d.shape[0]
    TB, B_pad, n_tiles = _choose_batch_tiling(B, compute_dtype)
    if B_pad != B:
        x2d = jnp.pad(x2d, ((0, B_pad - B), (0, 0)))

    # Advisory cost estimate.
    flops = 2 * B_pad * (D_IN * H1 + H1 * H2_PAD + H2_PAD * OUT_PAD)
    transcendentals = B_pad * (H1 + H2_PAD)
    w_bytes = sum(int(a.size) * a.dtype.itemsize for a in (w1, b1, w2, b2, w3, b3))
    bytes_accessed = (int(B_pad) * D_IN * 4 + w_bytes
                      + int(B_pad) * OUT_PAD * jnp.dtype(out_dtype).itemsize)
    cost = pl.CostEstimate(flops=int(flops), transcendentals=int(transcendentals),
                           bytes_accessed=int(bytes_accessed))

    out_pad = pl.pallas_call(
        _mlp_kernel,
        out_shape=jax.ShapeDtypeStruct((B_pad, OUT_PAD), out_dtype),
        grid=(n_tiles,),
        in_specs=[
            pl.BlockSpec((TB, D_IN), lambda i: (i, 0)),          # x tile (f32, pipelined)
            pl.BlockSpec((D_IN, H1), lambda i: (0, 0)),          # w1 resident
            pl.BlockSpec((1, H1), lambda i: (0, 0)),             # b1 resident
            pl.BlockSpec((H1, H2_PAD), lambda i: (0, 0)),        # w2 resident
            pl.BlockSpec((1, H2_PAD), lambda i: (0, 0)),         # b2 resident
            pl.BlockSpec((H2_PAD, OUT_PAD), lambda i: (0, 0)),   # w3 resident
            pl.BlockSpec((1, OUT_PAD), lambda i: (0, 0)),        # b3 resident
        ],
        out_specs=pl.BlockSpec((TB, OUT_PAD), lambda i: (i, 0)),
        compiler_params=pltpu.CompilerParams(
            dimension_semantics=("parallel",),    # shard batch tiles across TCs on v7x
            vmem_limit_bytes=VMEM_LIMIT_BYTES,
        ),
        cost_estimate=cost,
    )(x2d, w1, b1, w2, b2, w3, b3)

    return out_pad[:B, :10].astype(jnp.float32)


def init_params(key):
    """Deterministic init mimicking nn.Linear default (uniform +/- 1/sqrt(fan_in))."""
    def linear(k, fan_in, fan_out):
        kw, kb = jax.random.split(k)
        bound = 1.0 / jnp.sqrt(jnp.float32(fan_in))
        # stored as (in, out) so the kernel does x @ W
        w = jax.random.uniform(kw, (fan_in, fan_out), jnp.float32, -bound, bound)
        b = jax.random.uniform(kb, (fan_out,), jnp.float32, -bound, bound)
        return w, b

    k1, k2, k3 = jax.random.split(key, 3)
    w1, b1 = linear(k1, 28 * 28, 512)
    w2, b2 = linear(k2, 512, 64)
    w3, b3 = linear(k3, 64, 10)
    return {"w1": w1, "b1": b1, "w2": w2, "b2": b2, "w3": w3, "b3": b3}


def _reference_forward(x, params, matmul_dtype=jnp.float32):
    """Pure-JAX reference. matmul_dtype lets us match the kernel's bf16 operand cast."""
    x2d = x.reshape(-1, 28 * 28).astype(jnp.float32)

    def lin(h, w, b):
        return jnp.dot(h.astype(matmul_dtype), w.astype(matmul_dtype),
                       preferred_element_type=jnp.float32) + b

    h1 = jax.nn.sigmoid(lin(x2d, params["w1"], params["b1"]))
    h2 = jax.nn.sigmoid(lin(h1, params["w2"], params["b2"]))
    return lin(h2, params["w3"], params["b3"])


# TODO(synk): CrossEntropyLoss / SGD from the original module are training-only and not part
# of forward(); they are intentionally not implemented here.

if __name__ == "__main__":
    key = jax.random.PRNGKey(0)
    k_params, k_x = jax.random.split(key)

    params = init_params(k_params)
    # small MNIST-like batch, NCHW
    x = jax.random.normal(k_x, (8, 1, 28, 28), jnp.float32)

    # --- exact f32 path: verifies the original module's forward semantics ---
    prep_f32 = prepare_params(params, compute_dtype=jnp.float32)
    out_f32 = jax.block_until_ready(fc_hdrm_net_forward(x, prep_f32))
    ref_f32 = _reference_forward(x, params)
    assert out_f32.shape == (8, 10), out_f32.shape
    assert jnp.allclose(out_f32, ref_f32, atol=1e-4, rtol=1e-4), "f32 mismatch vs reference"

    # --- default bf16-MXU path (bf16 activations + bf16 output): looser tolerance ---
    prep_bf16 = prepare_params(params, compute_dtype=jnp.bfloat16)
    out_bf16 = jax.block_until_ready(fc_hdrm_net_forward(x, prep_bf16))
    ref_bf16 = _reference_forward(x, params, matmul_dtype=jnp.bfloat16)
    assert out_bf16.shape == (8, 10), out_bf16.shape
    assert jnp.allclose(out_bf16, ref_bf16, atol=3e-2, rtol=3e-2), "bf16 mismatch vs reference"

    print("KERNEL_OK")
</pallas_src>

<mosaic_0001>
module attributes {stable_mosaic.version = 11 : i64} {
  func.func @_mlp_kernel(%arg0: i32, %arg1: memref<8x784xf32, #tpu.memory_space<vmem>>, %arg2: memref<784x512xf32, #tpu.memory_space<vmem>>, %arg3: memref<1x512xf32, #tpu.memory_space<vmem>>, %arg4: memref<512x128xf32, #tpu.memory_space<vmem>>, %arg5: memref<1x128xf32, #tpu.memory_space<vmem>>, %arg6: memref<128x128xf32, #tpu.memory_space<vmem>>, %arg7: memref<1x128xf32, #tpu.memory_space<vmem>>, %arg8: memref<8x128xf32, #tpu.memory_space<vmem>>) attributes {dimension_semantics = [#tpu.dimension_semantics<parallel>], iteration_bounds = array<i64: 1>, scalar_prefetch = 0 : i64, scratch_operands = 0 : i64, tpu.core_type = #tpu.core_type<tc>, window_params = [{transform_indices = @transform_0, window_bounds = array<i64: 8, 784>}, {pipeline_mode = #tpu.pipeline_mode<synchronous>, transform_indices = @transform_1, window_bounds = array<i64: 784, 512>}, {pipeline_mode = #tpu.pipeline_mode<synchronous>, transform_indices = @transform_2, window_bounds = array<i64: 1, 512>}, {pipeline_mode = #tpu.pipeline_mode<synchronous>, transform_indices = @transform_3, window_bounds = array<i64: 512, 128>}, {pipeline_mode = #tpu.pipeline_mode<synchronous>, transform_indices = @transform_4, window_bounds = array<i64: 1, 128>}, {pipeline_mode = #tpu.pipeline_mode<synchronous>, transform_indices = @transform_5, window_bounds = array<i64: 128, 128>}, {pipeline_mode = #tpu.pipeline_mode<synchronous>, transform_indices = @transform_6, window_bounds = array<i64: 1, 128>}, {transform_indices = @transform_7, window_bounds = array<i64: 8, 128>}]} {
    %c0 = arith.constant 0 : index
    %c0_0 = arith.constant 0 : index
    %0 = vector.load %arg1[%c0, %c0_0] : memref<8x784xf32, #tpu.memory_space<vmem>>, vector<8x784xf32>
    %c0_1 = arith.constant 0 : index
    %c0_2 = arith.constant 0 : index
    %1 = vector.load %arg2[%c0_1, %c0_2] : memref<784x512xf32, #tpu.memory_space<vmem>>, vector<784x512xf32>
    %cst = arith.constant dense<0.000000e+00> : vector<8x512xf32>
    %2 = tpu.matmul %0, %1, %cst {dimension_numbers = #tpu.dot_dimension_numbers<[1], [0], [0], [1], [0, 0, 1, 1], [], []>} : vector<8x784xf32>, vector<784x512xf32>, vector<8x512xf32> -> vector<8x512xf32>
    %c0_3 = arith.constant 0 : index
    %c0_4 = arith.constant 0 : index
    %3 = vector.load %arg3[%c0_3, %c0_4] : memref<1x512xf32, #tpu.memory_space<vmem>>, vector<1x512xf32>
    %4 = vector.broadcast %3 : vector<1x512xf32> to vector<8x512xf32>
    %5 = arith.addf %2, %4 : vector<8x512xf32>
    %cst_5 = arith.constant 5.000000e-01 : f32
    %6 = vector.broadcast %cst_5 : f32 to vector<8x512xf32>
    %7 = arith.mulf %6, %5 : vector<8x512xf32>
    %8 = math.tanh %7 : vector<8x512xf32>
    %cst_6 = arith.constant 5.000000e-01 : f32
    %9 = vector.broadcast %cst_6 : f32 to vector<8x512xf32>
    %10 = arith.mulf %8, %9 : vector<8x512xf32>
    %cst_7 = arith.constant 5.000000e-01 : f32
    %11 = vector.broadcast %cst_7 : f32 to vector<8x512xf32>
    %12 = arith.addf %10, %11 : vector<8x512xf32>
    %c0_8 = arith.constant 0 : index
    %c0_9 = arith.constant 0 : index
    %13 = vector.load %arg4[%c0_8, %c0_9] : memref<512x128xf32, #tpu.memory_space<vmem>>, vector<512x128xf32>
    %cst_10 = arith.constant dense<0.000000e+00> : vector<8x128xf32>
    %14 = tpu.matmul %12, %13, %cst_10 {dimension_numbers = #tpu.dot_dimension_numbers<[1], [0], [0], [1], [0, 0, 1, 1], [], []>} : vector<8x512xf32>, vector<512x128xf32>, vector<8x128xf32> -> vector<8x128xf32>
    %c0_11 = arith.constant 0 : index
    %c0_12 = arith.constant 0 : index
    %15 = vector.load %arg5[%c0_11, %c0_12] : memref<1x128xf32, #tpu.memory_space<vmem>>, vector<1x128xf32>
    %16 = vector.broadcast %15 : vector<1x128xf32> to vector<8x128xf32>
    %17 = arith.addf %14, %16 : vector<8x128xf32>
    %cst_13 = arith.constant 5.000000e-01 : f32
    %18 = vector.broadcast %cst_13 : f32 to vector<8x128xf32>
    %19 = arith.mulf %18, %17 : vector<8x128xf32>
    %20 = math.tanh %19 : vector<8x128xf32>
    %cst_14 = arith.constant 5.000000e-01 : f32
    %21 = vector.broadcast %cst_14 : f32 to vector<8x128xf32>
    %22 = arith.mulf %20, %21 : vector<8x128xf32>
    %cst_15 = arith.constant 5.000000e-01 : f32
    %23 = vector.broadcast %cst_15 : f32 to vector<8x128xf32>
    %24 = arith.addf %22, %23 : vector<8x128xf32>
    %c0_16 = arith.constant 0 : index
    %c0_17 = arith.constant 0 : index
    %25 = vector.load %arg6[%c0_16, %c0_17] : memref<128x128xf32, #tpu.memory_space<vmem>>, vector<128x128xf32>
    %cst_18 = arith.constant dense<0.000000e+00> : vector<8x128xf32>
    %26 = tpu.matmul %24, %25, %cst_18 {dimension_numbers = #tpu.dot_dimension_numbers<[1], [0], [0], [1], [0, 0, 1, 1], [], []>} : vector<8x128xf32>, vector<128x128xf32>, vector<8x128xf32> -> vector<8x128xf32>
    %c0_19 = arith.constant 0 : index
    %c0_20 = arith.constant 0 : index
    %27 = vector.load %arg7[%c0_19, %c0_20] : memref<1x128xf32, #tpu.memory_space<vmem>>, vector<1x128xf32>
    %28 = vector.broadcast %27 : vector<1x128xf32> to vector<8x128xf32>
    %29 = arith.addf %26, %28 : vector<8x128xf32>
    %c0_21 = arith.constant 0 : index
    %c0_22 = arith.constant 0 : index
    %30 = vector.load %arg8[%c0_21, %c0_22] : memref<8x128xf32, #tpu.memory_space<vmem>>, vector<8x128xf32>
    tpu.vector_store %arg8[%c0_21, %c0_22], %29 {strides = array<i32>} : memref<8x128xf32, #tpu.memory_space<vmem>>, vector<8x128xf32>,
    return
  }
  func.func @transform_0(%arg0: i32) -> (i32, i32) {
    %c0_i32 = arith.constant 0 : i32
    %c0_i32_0 = arith.constant 0 : i32
    return %arg0, %c0_i32 : i32, i32
  }
  func.func @transform_1(%arg0: i32) -> (i32, i32) {
    %c0_i32 = arith.constant 0 : i32
    %c0_i32_0 = arith.constant 0 : i32
    %c0_i32_1 = arith.constant 0 : i32
    return %c0_i32, %c0_i32_0 : i32, i32
  }
  func.func @transform_2(%arg0: i32) -> (i32, i32) {
    %c0_i32 = arith.constant 0 : i32
    %c0_i32_0 = arith.constant 0 : i32
    %c0_i32_1 = arith.constant 0 : i32
    return %c0_i32, %c0_i32_0 : i32, i32
  }
  func.func @transform_3(%arg0: i32) -> (i32, i32) {
    %c0_i32 = arith.constant 0 : i32
    %c0_i32_0 = arith.constant 0 : i32
    %c0_i32_1 = arith.constant 0 : i32
    return %c0_i32, %c0_i32_0 : i32, i32
  }
  func.func @transform_4(%arg0: i32) -> (i32, i32) {
    %c0_i32 = arith.constant 0 : i32
    %c0_i32_0 = arith.constant 0 : i32
    %c0_i32_1 = arith.constant 0 : i32
    return %c0_i32, %c0_i32_0 : i32, i32
  }
  func.func @transform_5(%arg0: i32) -> (i32, i32) {
    %c0_i32 = arith.constant 0 : i32
    %c0_i32_0 = arith.constant 0 : i32
    %c0_i32_1 = arith.constant 0 : i32
    return %c0_i32, %c0_i32_0 : i32, i32
  }
  func.func @transform_6(%arg0: i32) -> (i32, i32) {
    %c0_i32 = arith.constant 0 : i32
    %c0_i32_0 = arith.constant 0 : i32
    %c0_i32_1 = arith.constant 0 : i32
    return %c0_i32, %c0_i32_0 : i32, i32
  }
  func.func @transform_7(%arg0: i32) -> (i32, i32) {
    %c0_i32 = arith.constant 0 : i32
    %c0_i32_0 = arith.constant 0 : i32
    return %arg0, %c0_i32 : i32, i32
  }
}

</mosaic_0001>

<bundles_post_ra>
// kernel: tpu_custom_call.1
= control target key start
LH: loop header
LB: loop body
LE: loop exit
PB: predicated region body
PF: predicated region fallthrough
CT: control target
= control target key end

     0   :  { %12 = vsyncpa [#allocation3], 0  ;;  %s2446_s0 = inlined_call_operand.hbm [shape: f32[8,784], index: 0, kind: input, shape index: {}]   ;;  %s2447_s1 = inlined_call_operand.hbm [shape: f32[784,512], index: 1, kind: input, shape index: {}]   ;;  %s2448_s2 = inlined_call_operand.hbm [shape: f32[1,512], index: 2, kind: input, shape index: {}]   ;;  %s2449_s3 = inlined_call_operand.hbm [shape: f32[512,128], index: 3, kind: input, shape index: {}]   ;;  %s2450_s4 = inlined_call_operand.hbm [shape: f32[1,128], index: 4, kind: input, shape index: {}]   ;;  %s2451_s5 = inlined_call_operand.hbm [shape: f32[128,128], index: 5, kind: input, shape index: {}]   ;;  %s2452_s6 = inlined_call_operand.hbm [shape: f32[1,128], index: 6, kind: input, shape index: {}]   ;;  %s2453_s7 = inlined_call_operand.hbm [shape: f32[8,128], index: 7, kind: output, shape index: {}]  }
   0x1   :  { %13 = vsyncpa [#allocation6], 0 }
   0x2   :  { %14 = vsyncpa [#allocation9], 0 }
   0x3   :  { %15 = vsyncpa [#allocation12], 0 }
   0x4   :  { %16 = vsyncpa [#allocation4], 0  ;;  %s2284_s24 = smov [#allocation5]   ;;  %s2098_s28 = scalar_lea.hbm %s2447_s1, 50176 }
   0x5   :  { %s32_s25 = sshll.u32 %s2284_s24, 4  ;;  %p2099_p0 = scmp.ne.s32.totalorder %s2447_s1, %s2098_s28  ;;  %s33_s25 = int_to_ptr.vmem [resolvable:$true] %s32_s25 }
   0x6   :  { %p2102_p1 = scmp.lt.u32.totalorder %s2098_s28, %s2447_s1 }
   0x8   :  { %p2104_p2 = pnand %p2102_p1, %p2099_p0 }
   0xa   :  { %2107 = shalt.err (!%p2104_p2)
}
   0xb   :  { %s2108_s10 = scalar_lea.vmem %s33_s25, 50176  ;;  %p2113_p4 = scmp.lt.s32.totalorder %s33_s25, %s33_s25 }
   0xc   :  { %p2109_p3 = scmp.ne.s32.totalorder %s33_s25, %s2108_s10  ;;  %p2114_p5 = scmp.lt.s32.totalorder %s2108_s10, %s2108_s10 }
   0xe   :  { %p2115_p6 = por %p2114_p5, %p2113_p4 }
  0x10   :  { %p2116_p7 = pnand %p2115_p6, %p2109_p3 }
  0x12   :  { %2119 = shalt.err (!%p2116_p7)
}
  0x13   :  { %s2285_s11 = smov 512   ;;  %s2286_s12 = smov 32  }
  0x14   :  { %38 = dma.hbm_to_vmem [thread:$0]  %s2447_s1, 50176, %s33_s25, [#allocation6], %s2285_s11, %s2285_s11, %s2286_s12  }
  0x15   :  { %s2287_s15 = smov [#allocation8]   ;;  %s2120_s19 = scalar_lea.hbm %s2449_s3, 8192 }
  0x16   :  { %s54_s16 = sshll.u32 %s2287_s15, 4  ;;  %p2121_p8 = scmp.ne.s32.totalorder %s2449_s3, %s2120_s19  ;;  %s55_s16 = int_to_ptr.vmem [resolvable:$true] %s54_s16 }
  0x17   :  { %p2124_p9 = scmp.lt.u32.totalorder %s2120_s19, %s2449_s3 }
  0x19   :  { %p2126_p10 = pnand %p2124_p9, %p2121_p8 }
  0x1b   :  { %2129 = shalt.err (!%p2126_p10)
}
  0x1c   :  { %s2130_s24 = scalar_lea.vmem %s55_s16, 8192  ;;  %p2135_p12 = scmp.lt.s32.totalorder %s55_s16, %s55_s16 }
  0x1d   :  { %p2131_p11 = scmp.ne.s32.totalorder %s55_s16, %s2130_s24  ;;  %p2136_p13 = scmp.lt.s32.totalorder %s2130_s24, %s2130_s24 }
  0x1f   :  { %p2137_p0 = por %p2136_p13, %p2135_p12 }
  0x21   :  { %p2138_p1 = pnand %p2137_p0, %p2131_p11 }
  0x23   :  { %2141 = shalt.err (!%p2138_p1)
}
  0x24   :  { %s2288_s1 = smov 128   ;;  %s2289_s25 = smov 8  }
  0x25   :  { %60 = dma.hbm_to_vmem [thread:$0]  %s2449_s3, 8192, %s55_s16, [#allocation9], %s2288_s1, %s2288_s1, %s2289_s25  }
  0x26   :  { %s2290_s28 = smov [#allocation11]   ;;  %s2291_s30 = smov [#allocation2]  }
  0x27   :  { %s76_s29 = sshll.u32 %s2290_s28, 4  ;;  %s23_s8 = sshll.u32 %s2291_s30, 4  ;;  %s77_s29 = int_to_ptr.vmem [resolvable:$true] %s76_s29  ;;  %s24_s8 = int_to_ptr.vmem [resolvable:$true] %s23_s8 }
  0x28   :  { %s2142_s11 = scalar_lea.hbm %s2451_s5, 2048 }
  0x29   :  { %p2143_p2 = scmp.ne.s32.totalorder %s2451_s5, %s2142_s11  ;;  %p2146_p3 = scmp.lt.u32.totalorder %s2142_s11, %s2451_s5 }
  0x2b   :  { %p2148_p4 = pnand %p2146_p3, %p2143_p2 }
  0x2d   :  { %2151 = shalt.err (!%p2148_p4)
}
  0x2e   :  { %s2152_s3 = scalar_lea.vmem %s77_s29, 2048  ;;  %p2157_p6 = scmp.lt.s32.totalorder %s77_s29, %s77_s29 }
  0x2f   :  { %p2153_p5 = scmp.ne.s32.totalorder %s77_s29, %s2152_s3  ;;  %p2158_p7 = scmp.lt.s32.totalorder %s2152_s3, %s2152_s3 }
  0x31   :  { %p2159_p8 = por %p2158_p7, %p2157_p6 }
  0x33   :  { %p2160_p9 = pnand %p2159_p8, %p2153_p5 }
  0x35   :  { %2163 = shalt.err (!%p2160_p9)
}
  0x36   :  { %82 = dma.hbm_to_vmem [thread:$0]  %s2451_s5, 2048, %s77_s29, [#allocation12], %s2288_s1, %s2288_s1, %s2289_s25  }
  0x37   :  { %s2164_s20 = scalar_lea.hbm %s2446_s0, 896 }
  0x38   :  { %p2165_p10 = scmp.ne.s32.totalorder %s2446_s0, %s2164_s20  ;;  %p2168_p11 = scmp.lt.u32.totalorder %s2164_s20, %s2446_s0 }
  0x3a   :  { %p2170_p12 = pnand %p2168_p11, %p2165_p10 }
  0x3c   :  { %2173 = shalt.err (!%p2170_p12)
}
  0x3d   :  { %s2174_s26 = scalar_lea.vmem %s24_s8, 896  ;;  %p2179_p0 = scmp.lt.s32.totalorder %s24_s8, %s24_s8 }
  0x3e   :  { %p2175_p13 = scmp.ne.s32.totalorder %s24_s8, %s2174_s26  ;;  %p2180_p1 = scmp.lt.s32.totalorder %s2174_s26, %s2174_s26 }
  0x40   :  { %p2181_p2 = por %p2180_p1, %p2179_p0 }
  0x42   :  { %p2182_p3 = pnand %p2181_p2, %p2175_p13 }
  0x44   :  { %2185 = shalt.err (!%p2182_p3)
}
  0x45   :  { %26 = dma.hbm_to_vmem [thread:$0]  %s2446_s0, 896, %s24_s8, [#allocation3]  }
  0x46   :  { %s2292_s25 = smov [#allocation7]   ;;  %s2293_s28 = smov [#allocation10]  }
  0x47   :  { %s45_s27 = sshll.u32 %s2292_s25, 4  ;;  %s67_s29 = sshll.u32 %s2293_s28, 4  ;;  %s46_s27 = int_to_ptr.vmem [resolvable:$true] %s45_s27  ;;  %s68_s29 = int_to_ptr.vmem [resolvable:$true] %s67_s29 }
  0x48   :  { %s2186_s10 = scalar_lea.hbm %s2448_s2, 64 }
  0x49   :  { %p2187_p4 = scmp.ne.s32.totalorder %s2448_s2, %s2186_s10  ;;  %p2190_p5 = scmp.lt.u32.totalorder %s2186_s10, %s2448_s2 }
  0x4b   :  { %p2192_p6 = pnand %p2190_p5, %p2187_p4 }
  0x4d   :  { %2195 = shalt.err (!%p2192_p6)
}
  0x4e   :  { %s2196_s0 = scalar_lea.vmem %s46_s27, 64  ;;  %p2201_p8 = scmp.lt.s32.totalorder %s46_s27, %s46_s27 }
  0x4f   :  { %p2197_p7 = scmp.ne.s32.totalorder %s46_s27, %s2196_s0  ;;  %p2202_p9 = scmp.lt.s32.totalorder %s2196_s0, %s2196_s0 }
  0x51   :  { %p2203_p10 = por %p2202_p9, %p2201_p8 }
  0x53   :  { %p2204_p11 = pnand %p2203_p10, %p2197_p7 }
  0x55   :  { %2207 = shalt.err (!%p2204_p11)
}
  0x56   :  { %48 = dma.hbm_to_vmem [thread:$0]  %s2448_s2, 64, %s46_s27, [#allocation6]  }
  0x57   :  { %s2208_s17 = scalar_lea.hbm %s2450_s4, 16 }
  0x58   :  { %p2209_p12 = scmp.ne.s32.totalorder %s2450_s4, %s2208_s17  ;;  %p2212_p13 = scmp.lt.u32.totalorder %s2208_s17, %s2450_s4 }
  0x5a   :  { %p2214_p0 = pnand %p2212_p13, %p2209_p12 }
  0x5c   :  { %2217 = shalt.err (!%p2214_p0)
}
  0x5d   :  { %s2218_s22 = scalar_lea.vmem %s68_s29, 16  ;;  %s2222_s23 = scalar_lea.vmem %s68_s29, 32 }
  0x5e   :  { %p2219_p1 = scmp.ne.s32.totalorder %s68_s29, %s2218_s22  ;;  %p2223_p2 = scmp.lt.s32.totalorder %s68_s29, %s68_s29 }
  0x5f   :  { %p2224_p3 = scmp.lt.s32.totalorder %s2222_s23, %s2218_s22 }
  0x61   :  { %p2225_p4 = por %p2224_p3, %p2223_p2 }
  0x63   :  { %p2226_p5 = pnand %p2225_p4, %p2219_p1 }
  0x65   :  { %2229 = shalt.err (!%p2226_p5)
}
  0x66   :  { %70 = dma.hbm_to_vmem [thread:$0]  %s2450_s4, 16, %s68_s29, [#allocation9]  }
  0x67   :  { %s2294_s26 = smov [#allocation13]   ;;  %s2230_s27 = scalar_lea.hbm %s2452_s6, 16 }
  0x68   :  { %s89_s5 = sshll.u32 %s2294_s26, 4  ;;  %p2231_p6 = scmp.ne.s32.totalorder %s2452_s6, %s2230_s27  ;;  %s90_s5 = int_to_ptr.vmem [resolvable:$true] %s89_s5 }
  0x69   :  { %p2234_p7 = scmp.lt.u32.totalorder %s2230_s27, %s2452_s6 }
  0x6b   :  { %p2236_p8 = pnand %p2234_p7, %p2231_p6 }
  0x6d   :  { %2239 = shalt.err (!%p2236_p8)
}
  0x6e   :  { %s2240_s11 = scalar_lea.vmem %s90_s5, 16  ;;  %s2244_s4 = scalar_lea.vmem %s90_s5, 32 }
  0x6f   :  { %p2241_p9 = scmp.ne.s32.totalorder %s90_s5, %s2240_s11  ;;  %p2245_p10 = scmp.lt.s32.totalorder %s90_s5, %s90_s5 }
  0x70   :  { %p2246_p11 = scmp.lt.s32.totalorder %s2244_s4, %s2240_s11 }
  0x72   :  { %p2247_p12 = por %p2246_p11, %p2245_p10 }
  0x74   :  { %p2248_p13 = pnand %p2247_p12, %p2241_p9 }
  0x76   :  { %2251 = shalt.err (!%p2248_p13)
}
  0x77   :  { %92 = dma.hbm_to_vmem [thread:$0]  %s2452_s6, 16, %s90_s5, [#allocation12]  }
  0x78   :  { %2274 = dma.done.wait [#allocation3], 896  }
  0x79   :  { %2275 = vsyncadd [#allocation3], 4294966400 }
  0x7a   :  { %2276 = dma.done.wait [#allocation6], 50240  }
  0x7b   :  { %2277 = vsyncadd [#allocation6], 4294917056 }
  0x7c   :  { %2278 = dma.done.wait [#allocation9], 8208  }
  0x7d   :  { %2279 = vsyncadd [#allocation9], 4294959088 }
  0x7e   :  { %2280 = dma.done.wait [#allocation12], 2064  }
  0x7f   :  { %2281 = vsyncadd [#allocation12], 4294965232  ;;  %v2295_v0 = vmov 0.0   ;;  %v122_v1 = vld [vmem:[#allocation5 + $0x8] sm:$0xff]  ;;  %v121_v6 = vld [vmem:[#allocation5] sm:$0xff]  ;;  %vm535_vm0 = vcmask 130048  }
  0x80   :  { %816 = vmatprep.mubr.f32.mxu1 %v2295_v0  ;;  %v126_v2 = vld [vmem:[#allocation5 + $0x28] sm:$0xff]  ;;  %v125_v7 = vld [vmem:[#allocation5 + $0x20] sm:$0xff]  ;;  %v120_v15 = vld [vmem:[#allocation2 + $0x30] sm:$0xff]  ;;  %vm2297_vm1 = vmmov 0   ;;  %s2298_s6 = smov [#allocation14]  }
  0x81   :  { %v506_v3 = vld [vmem:[#allocation5 + $0xc08] sm:$0xff]  ;;  %v1576_v4 = vpack.c.bf16 %v126_v2, %v122_v1  ;;  %v1578_v9 = vpack.c.bf16 %v125_v7, %v121_v6  ;;  %v505_v10 = vld [vmem:[#allocation5 + $0xc00] sm:$0xff]  ;;  %v124_v16 = vld [vmem:[#allocation5 + $0x18] sm:$0xff]  ;;  %s1438_s13 = sshll.u32 %s2298_s6, 4  ;;  %s1439_s13 = int_to_ptr.vmem [resolvable:$true] %s1438_s13 }
  0x82   :  { %v510_v5 = vld [vmem:[#allocation5 + $0xc28] sm:$0xff]  ;;  %v509_v11 = vld [vmem:[#allocation5 + $0xc20] sm:$0xff]  ;;  %v128_v18 = vld [vmem:[#allocation5 + $0x38] sm:$0xff]  ;;  %s2252_s14 = scalar_lea.vmem %s1439_s13, 128  ;;  %p2257_p1 = scmp.lt.s32.totalorder %s1439_s13, %s1439_s13 }
  0x83   :  { %v1768_v8 = vpack.c.bf16 %v510_v5, %v506_v3  ;;  %v130_v12 = vld [vmem:[#allocation5 + $0x48] sm:$0xff]  ;;  %1577 = vmatprep.subr.bf16.mxu0 %v1576_v4  ;;  %v1770_v13 = vpack.c.bf16 %v509_v11, %v505_v10  ;;  %v129_v19 = vld [vmem:[#allocation5 + $0x40] sm:$0xff]  ;;  %v1772_v21 = vpack.c.bf16 %v128_v18, %v124_v16  ;;  %v123_v23 = vld [vmem:[#allocation5 + $0x10] sm:$0xff]  ;;  %p2253_p0 = scmp.ne.s32.totalorder %s1439_s13, %s2252_s14  ;;  %p2258_p2 = scmp.lt.s32.totalorder %s2252_s14, %s2252_s14 }
  0x84   :  { %v134_v14 = vld [vmem:[#allocation5 + $0x68] sm:$0xff]  ;;  %1579 = vmatpush1.bf16.msra.mxu0 %v1578_v9  ;;  %v133_v20 = vld [vmem:[#allocation5 + $0x60] sm:$0xff]  ;;  %v127_v24 = vld [vmem:[#allocation5 + $0x30] sm:$0xff] }
  0x85   :  { %1769 = vmatprep.subr.bf16.mxu1 %v1768_v8  ;;  %v1580_v17 = vpack.c.bf16 %v134_v14, %v130_v12  ;;  %v1582_v22 = vpack.c.bf16 %v133_v20, %v129_v19  ;;  %v138_v25 = vld [vmem:[#allocation5 + $0x88] sm:$0xff]  ;;  %v1774_v26 = vpack.c.bf16 %v127_v24, %v123_v23  ;;  %v132_v28 = vld [vmem:[#allocation5 + $0x58] sm:$0xff]  ;;  %v137_v32 = vld [vmem:[#allocation5 + $0x80] sm:$0xff]  ;;  %p2259_p3 = por %p2258_p2, %p2257_p1 }
  0x86   :  { %1771 = vmatpush1.bf16.msra.mxu1 %v1770_v13  ;;  %v142_v27 = vld [vmem:[#allocation5 + $0xa8] sm:$0xff]  ;;  %v136_v29 = vld [vmem:[#allocation5 + $0x78] sm:$0xff]  ;;  %v141_v33 = vld [vmem:[#allocation5 + $0xa0] sm:$0xff] }
  0x87   :  { %1581 = vmatprep.subr.bf16.mxu0 %v1580_v17  ;;  %1773 = vmatprep.subr.bf16.mxu1 %v1772_v21  ;;  %v1584_v30 = vpack.c.bf16 %v142_v27, %v138_v25  ;;  %v1776_v31 = vpack.c.bf16 %v136_v29, %v132_v28  ;;  %v131_v34 = vld [vmem:[#allocation5 + $0x50] sm:$0xff]  ;;  %v1586_v35 = vpack.c.bf16 %v141_v33, %v137_v32  ;;  %v146_v37 = vld [vmem:[#allocation5 + $0xc8] sm:$0xff]  ;;  %v140_v41 = vld [vmem:[#allocation5 + $0x98] sm:$0xff]  ;;  %p2260_p4 = pnand %p2259_p3, %p2253_p0 }
  0x88   :  { %1583 = vmatpush1.bf16.msra.mxu0 %v1582_v22  ;;  %v135_v36 = vld [vmem:[#allocation5 + $0x70] sm:$0xff]  ;;  %v150_v38 = vld [vmem:[#allocation5 + $0xe8] sm:$0xff]  ;;  %v144_v42 = vld [vmem:[#allocation5 + $0xb8] sm:$0xff] }
  0x89   :  { %1450 = vmatmul.mubr.msk.f32.vlgmr.msra.gmra.mrb[0].mxu1 %vm535_vm0, %v120_v15  ;;  %1585 = vmatprep.subr.bf16.mxu0 %v1584_v30  ;;  %v1778_v39 = vpack.c.bf16 %v135_v36, %v131_v34  ;;  %v1588_v40 = vpack.c.bf16 %v150_v38, %v146_v37  ;;  %v145_v43 = vld [vmem:[#allocation5 + $0xc0] sm:$0xff]  ;;  %v1780_v44 = vpack.c.bf16 %v144_v42, %v140_v41  ;;  %v139_v46 = vld [vmem:[#allocation5 + $0x90] sm:$0xff]  ;;  %v154_v48 = vld [vmem:[#allocation5 + $0x108] sm:$0xff] }
  0x8a   :  { %1775 = vmatpush1.bf16.msra.mxu1 %v1774_v26  ;;  %v149_v45 = vld [vmem:[#allocation5 + $0xe0] sm:$0xff]  ;;  %v143_v47 = vld [vmem:[#allocation5 + $0xb0] sm:$0xff]  ;;  %v158_v49 = vld [vmem:[#allocation5 + $0x128] sm:$0xff] }
  0x8b   :  { %1777 = vmatprep.subr.bf16.mxu1 %v1776_v31  ;;  %v148_v50 = vld [vmem:[#allocation5 + $0xd8] sm:$0xff]  ;;  %v1590_v51 = vpack.c.bf16 %v149_v45, %v145_v43  ;;  %v1782_v53 = vpack.c.bf16 %v143_v47, %v139_v46  ;;  %v1592_v54 = vpack.c.bf16 %v158_v49, %v154_v48  ;;  %v153_v55 = vld [vmem:[#allocation5 + $0x100] sm:$0xff]  ;;  %v147_v57 = vld [vmem:[#allocation5 + $0xd0] sm:$0xff] }
  0x8c   :  { %1587 = vmatpush1.bf16.msra.mxu0 %v1586_v35  ;;  %v152_v52 = vld [vmem:[#allocation5 + $0xf8] sm:$0xff]  ;;  %v157_v56 = vld [vmem:[#allocation5 + $0x120] sm:$0xff]  ;;  %v151_v59 = vld [vmem:[#allocation5 + $0xf0] sm:$0xff] }
  0x8d   :  { %1589 = vmatprep.subr.bf16.mxu0 %v1588_v40  ;;  %v1784_v58 = vpack.c.bf16 %v152_v52, %v148_v50  ;;  %v162_v60 = vld [vmem:[#allocation5 + $0x148] sm:$0xff]  ;;  %v156_v62 = vld [vmem:[#allocation5 + $0x118] sm:$0xff]  ;;  %v1594_v1 = vpack.c.bf16 %v157_v56, %v153_v55  ;;  %v1786_v2 = vpack.c.bf16 %v151_v59, %v147_v57  ;;  %v161_v4 = vld [vmem:[#allocation5 + $0x140] sm:$0xff] }
  0x8e   :  { %1779 = vmatpush1.bf16.msra.mxu1 %v1778_v39  ;;  %v166_v61 = vld [vmem:[#allocation5 + $0x168] sm:$0xff]  ;;  %v160_v63 = vld [vmem:[#allocation5 + $0x138] sm:$0xff]  ;;  %v165_v5 = vld [vmem:[#allocation5 + $0x160] sm:$0xff] }
  0x8f   :  { %1781 = vmatprep.subr.bf16.mxu1 %v1780_v44  ;;  %v1596_v3 = vpack.c.bf16 %v166_v61, %v162_v60  ;;  %v155_v6 = vld [vmem:[#allocation5 + $0x110] sm:$0xff]  ;;  %v1788_v7 = vpack.c.bf16 %v160_v63, %v156_v62  ;;  %v170_v9 = vld [vmem:[#allocation5 + $0x188] sm:$0xff]  ;;  %v164_v11 = vld [vmem:[#allocation5 + $0x158] sm:$0xff]  ;;  %v1598_v13 = vpack.c.bf16 %v165_v5, %v161_v4 }
  0x90   :  { %1591 = vmatpush1.bf16.msra.mxu0 %v1590_v51  ;;  %v159_v8 = vld [vmem:[#allocation5 + $0x130] sm:$0xff]  ;;  %v174_v10 = vld [vmem:[#allocation5 + $0x1a8] sm:$0xff]  ;;  %v168_v12 = vld [vmem:[#allocation5 + $0x178] sm:$0xff] }
  0x91   :  { %1593 = vmatprep.subr.bf16.mxu0 %v1592_v54  ;;  %v1790_v14 = vpack.c.bf16 %v159_v8, %v155_v6  ;;  %v1600_v15 = vpack.c.bf16 %v174_v10, %v170_v9  ;;  %v169_v16 = vld [vmem:[#allocation5 + $0x180] sm:$0xff]  ;;  %v163_v18 = vld [vmem:[#allocation5 + $0x150] sm:$0xff]  ;;  %v1792_v19 = vpack.c.bf16 %v168_v12, %v164_v11  ;;  %v178_v21 = vld [vmem:[#allocation5 + $0x1c8] sm:$0xff] }
  0x92   :  { %1783 = vmatpush1.bf16.msra.mxu1 %v1782_v53  ;;  %v173_v17 = vld [vmem:[#allocation5 + $0x1a0] sm:$0xff]  ;;  %v167_v20 = vld [vmem:[#allocation5 + $0x170] sm:$0xff]  ;;  %v182_v22 = vld [vmem:[#allocation5 + $0x1e8] sm:$0xff] }
  0x93   :  { %1785 = vmatprep.subr.bf16.mxu1 %v1784_v58  ;;  %v172_v23 = vld [vmem:[#allocation5 + $0x198] sm:$0xff]  ;;  %v1602_v25 = vpack.c.bf16 %v173_v17, %v169_v16  ;;  %v1794_v26 = vpack.c.bf16 %v167_v20, %v163_v18  ;;  %v1604_v27 = vpack.c.bf16 %v182_v22, %v178_v21  ;;  %v177_v28 = vld [vmem:[#allocation5 + $0x1c0] sm:$0xff]  ;;  %v171_v30 = vld [vmem:[#allocation5 + $0x190] sm:$0xff] }
  0x94   :  { %1595 = vmatpush1.bf16.msra.mxu0 %v1594_v1  ;;  %v176_v24 = vld [vmem:[#allocation5 + $0x1b8] sm:$0xff]  ;;  %v181_v29 = vld [vmem:[#allocation5 + $0x1e0] sm:$0xff]  ;;  %v175_v32 = vld [vmem:[#allocation5 + $0x1b0] sm:$0xff] }
  0x95   :  { %1597 = vmatprep.subr.bf16.mxu0 %v1596_v3  ;;  %v1796_v31 = vpack.c.bf16 %v176_v24, %v172_v23  ;;  %v186_v33 = vld [vmem:[#allocation5 + $0x208] sm:$0xff]  ;;  %v180_v35 = vld [vmem:[#allocation5 + $0x1d8] sm:$0xff]  ;;  %v1606_v37 = vpack.c.bf16 %v181_v29, %v177_v28  ;;  %v1798_v38 = vpack.c.bf16 %v175_v32, %v171_v30  ;;  %v185_v40 = vld [vmem:[#allocation5 + $0x200] sm:$0xff] }
  0x96   :  { %1787 = vmatpush1.bf16.msra.mxu1 %v1786_v2  ;;  %v190_v34 = vld [vmem:[#allocation5 + $0x228] sm:$0xff]  ;;  %v184_v36 = vld [vmem:[#allocation5 + $0x1f8] sm:$0xff]  ;;  %v189_v41 = vld [vmem:[#allocation5 + $0x220] sm:$0xff] }
  0x97   :  { %1789 = vmatprep.subr.bf16.mxu1 %v1788_v7  ;;  %v1608_v39 = vpack.c.bf16 %v190_v34, %v186_v33  ;;  %v179_v42 = vld [vmem:[#allocation5 + $0x1d0] sm:$0xff]  ;;  %v1800_v43 = vpack.c.bf16 %v184_v36, %v180_v35  ;;  %v194_v45 = vld [vmem:[#allocation5 + $0x248] sm:$0xff]  ;;  %v188_v47 = vld [vmem:[#allocation5 + $0x218] sm:$0xff]  ;;  %v1610_v49 = vpack.c.bf16 %v189_v41, %v185_v40 }
  0x98   :  { %1599 = vmatpush1.bf16.msra.mxu0 %v1598_v13  ;;  %v183_v44 = vld [vmem:[#allocation5 + $0x1f0] sm:$0xff]  ;;  %v198_v46 = vld [vmem:[#allocation5 + $0x268] sm:$0xff]  ;;  %v192_v48 = vld [vmem:[#allocation5 + $0x238] sm:$0xff] }
  0x99   :  { %1601 = vmatprep.subr.bf16.mxu0 %v1600_v15  ;;  %v1802_v50 = vpack.c.bf16 %v183_v44, %v179_v42  ;;  %v1612_v51 = vpack.c.bf16 %v198_v46, %v194_v45  ;;  %v193_v52 = vld [vmem:[#allocation5 + $0x240] sm:$0xff]  ;;  %v187_v54 = vld [vmem:[#allocation5 + $0x210] sm:$0xff]  ;;  %v1804_v55 = vpack.c.bf16 %v192_v48, %v188_v47  ;;  %v202_v57 = vld [vmem:[#allocation5 + $0x288] sm:$0xff] }
  0x9a   :  { %1791 = vmatpush1.bf16.msra.mxu1 %v1790_v14  ;;  %v197_v53 = vld [vmem:[#allocation5 + $0x260] sm:$0xff]  ;;  %v191_v56 = vld [vmem:[#allocation5 + $0x230] sm:$0xff]  ;;  %v206_v58 = vld [vmem:[#allocation5 + $0x2a8] sm:$0xff] }
  0x9b   :  { %1793 = vmatprep.subr.bf16.mxu1 %v1792_v19  ;;  %v196_v59 = vld [vmem:[#allocation5 + $0x258] sm:$0xff]  ;;  %v1614_v61 = vpack.c.bf16 %v197_v53, %v193_v52  ;;  %v1806_v62 = vpack.c.bf16 %v191_v56, %v187_v54  ;;  %v1616_v63 = vpack.c.bf16 %v206_v58, %v202_v57  ;;  %v201_v1 = vld [vmem:[#allocation5 + $0x280] sm:$0xff]  ;;  %v195_v3 = vld [vmem:[#allocation5 + $0x250] sm:$0xff] }
  0x9c   :  { %1603 = vmatpush1.bf16.msra.mxu0 %v1602_v25  ;;  %v200_v60 = vld [vmem:[#allocation5 + $0x278] sm:$0xff]  ;;  %v205_v2 = vld [vmem:[#allocation5 + $0x2a0] sm:$0xff]  ;;  %v199_v5 = vld [vmem:[#allocation5 + $0x270] sm:$0xff] }
  0x9d   :  { %1605 = vmatprep.subr.bf16.mxu0 %v1604_v27  ;;  %v1808_v4 = vpack.c.bf16 %v200_v60, %v196_v59  ;;  %v210_v6 = vld [vmem:[#allocation5 + $0x2c8] sm:$0xff]  ;;  %v204_v8 = vld [vmem:[#allocation5 + $0x298] sm:$0xff]  ;;  %v1618_v10 = vpack.c.bf16 %v205_v2, %v201_v1  ;;  %v1810_v11 = vpack.c.bf16 %v199_v5, %v195_v3  ;;  %v209_v13 = vld [vmem:[#allocation5 + $0x2c0] sm:$0xff] }
  0x9e   :  { %1795 = vmatpush1.bf16.msra.mxu1 %v1794_v26  ;;  %v214_v7 = vld [vmem:[#allocation5 + $0x2e8] sm:$0xff]  ;;  %v208_v9 = vld [vmem:[#allocation5 + $0x2b8] sm:$0xff]  ;;  %v213_v14 = vld [vmem:[#allocation5 + $0x2e0] sm:$0xff] }
  0x9f   :  { %1797 = vmatprep.subr.bf16.mxu1 %v1796_v31  ;;  %v1620_v12 = vpack.c.bf16 %v214_v7, %v210_v6  ;;  %v203_v15 = vld [vmem:[#allocation5 + $0x290] sm:$0xff]  ;;  %v1812_v16 = vpack.c.bf16 %v208_v9, %v204_v8  ;;  %v218_v18 = vld [vmem:[#allocation5 + $0x308] sm:$0xff]  ;;  %v212_v20 = vld [vmem:[#allocation5 + $0x2d8] sm:$0xff]  ;;  %v1622_v23 = vpack.c.bf16 %v213_v14, %v209_v13 }
  0xa0   :  { %1607 = vmatpush1.bf16.msra.mxu0 %v1606_v37  ;;  %v207_v17 = vld [vmem:[#allocation5 + $0x2b0] sm:$0xff]  ;;  %v222_v19 = vld [vmem:[#allocation5 + $0x328] sm:$0xff]  ;;  %v216_v21 = vld [vmem:[#allocation5 + $0x2f8] sm:$0xff] }
  0xa1   :  { %1609 = vmatprep.subr.bf16.mxu0 %v1608_v39  ;;  %v115_v22 = vld [vmem:[#allocation2 + $0x8] sm:$0xff]  ;;  %v1814_v24 = vpack.c.bf16 %v207_v17, %v203_v15  ;;  %v1624_v25 = vpack.c.bf16 %v222_v19, %v218_v18  ;;  %v217_v26 = vld [vmem:[#allocation5 + $0x300] sm:$0xff]  ;;  %v1816_v29 = vpack.c.bf16 %v216_v21, %v212_v20  ;;  %v226_v31 = vld [vmem:[#allocation5 + $0x348] sm:$0xff] }
  0xa2   :  { %1799 = vmatpush1.bf16.msra.mxu1 %v1798_v38  ;;  %603 = vmatprep.mubr.f32.mxu0 %v115_v22  ;;  %v221_v27 = vld [vmem:[#allocation5 + $0x320] sm:$0xff]  ;;  %v211_v28 = vld [vmem:[#allocation5 + $0x2d0] sm:$0xff]  ;;  %v230_v32 = vld [vmem:[#allocation5 + $0x368] sm:$0xff] }
  0xa3   :  { %1801 = vmatprep.subr.bf16.mxu1 %v1800_v43  ;;  %v215_v30 = vld [vmem:[#allocation5 + $0x2f0] sm:$0xff]  ;;  %887 = vmatprep.mubr.f32.mxu1 %v115_v22  ;;  %v220_v33 = vld [vmem:[#allocation5 + $0x318] sm:$0xff]  ;;  %v1626_v35 = vpack.c.bf16 %v221_v27, %v217_v26  ;;  %v1628_v37 = vpack.c.bf16 %v230_v32, %v226_v31  ;;  %v225_v38 = vld [vmem:[#allocation5 + $0x340] sm:$0xff] }
  0xa4   :  { %1611 = vmatpush1.bf16.msra.mxu0 %v1610_v49  ;;  %v224_v34 = vld [vmem:[#allocation5 + $0x338] sm:$0xff]  ;;  %v1818_v36 = vpack.c.bf16 %v215_v30, %v211_v28  ;;  %v229_v39 = vld [vmem:[#allocation5 + $0x360] sm:$0xff]  ;;  %v219_v40 = vld [vmem:[#allocation5 + $0x310] sm:$0xff] }
  0xa5   :  { %1613 = vmatprep.subr.bf16.mxu0 %v1612_v51  ;;  %v1820_v41 = vpack.c.bf16 %v224_v34, %v220_v33  ;;  %v223_v42 = vld [vmem:[#allocation5 + $0x330] sm:$0xff]  ;;  %v234_v43 = vld [vmem:[#allocation5 + $0x388] sm:$0xff]  ;;  %v228_v45 = vld [vmem:[#allocation5 + $0x358] sm:$0xff]  ;;  %v1630_v47 = vpack.c.bf16 %v229_v39, %v225_v38 }
  0xa6   :  { %1803 = vmatpush1.bf16.msra.mxu1 %v1802_v50  ;;  %v238_v44 = vld [vmem:[#allocation5 + $0x3a8] sm:$0xff]  ;;  %v232_v46 = vld [vmem:[#allocation5 + $0x378] sm:$0xff]  ;;  %v1822_v48 = vpack.c.bf16 %v223_v42, %v219_v40  ;;  %v233_v50 = vld [vmem:[#allocation5 + $0x380] sm:$0xff] }
  0xa7   :  { %1805 = vmatprep.subr.bf16.mxu1 %v1804_v55  ;;  %v1632_v49 = vpack.c.bf16 %v238_v44, %v234_v43  ;;  %v237_v51 = vld [vmem:[#allocation5 + $0x3a0] sm:$0xff]  ;;  %v227_v52 = vld [vmem:[#allocation5 + $0x350] sm:$0xff]  ;;  %v1824_v53 = vpack.c.bf16 %v232_v46, %v228_v45  ;;  %v242_v55 = vld [vmem:[#allocation5 + $0x3c8] sm:$0xff] }
  0xa8   :  { %1615 = vmatpush1.bf16.msra.mxu0 %v1614_v61  ;;  %v231_v54 = vld [vmem:[#allocation5 + $0x370] sm:$0xff]  ;;  %v246_v56 = vld [vmem:[#allocation5 + $0x3e8] sm:$0xff]  ;;  %v236_v57 = vld [vmem:[#allocation5 + $0x398] sm:$0xff]  ;;  %v1634_v59 = vpack.c.bf16 %v237_v51, %v233_v50 }
  0xa9   :  { %1617 = vmatprep.subr.bf16.mxu0 %v1616_v63  ;;  %v240_v58 = vld [vmem:[#allocation5 + $0x3b8] sm:$0xff]  ;;  %v1826_v60 = vpack.c.bf16 %v231_v54, %v227_v52  ;;  %v1636_v61 = vpack.c.bf16 %v246_v56, %v242_v55  ;;  %v245_v63 = vld [vmem:[#allocation5 + $0x3e0] sm:$0xff]  ;;  %v235_v1 = vld [vmem:[#allocation5 + $0x390] sm:$0xff] }
  0xaa   :  { %1807 = vmatpush1.bf16.msra.mxu1 %v1806_v62  ;;  %v241_v62 = vld [vmem:[#allocation5 + $0x3c0] sm:$0xff]  ;;  %v1828_v2 = vpack.c.bf16 %v240_v58, %v236_v57  ;;  %v239_v3 = vld [vmem:[#allocation5 + $0x3b0] sm:$0xff]  ;;  %v254_v5 = vld [vmem:[#allocation5 + $0x428] sm:$0xff] }
  0xab   :  { %1809 = vmatprep.subr.bf16.mxu1 %v1808_v4  ;;  %v250_v4 = vld [vmem:[#allocation5 + $0x408] sm:$0xff]  ;;  %v244_v6 = vld [vmem:[#allocation5 + $0x3d8] sm:$0xff]  ;;  %v1638_v8 = vpack.c.bf16 %v245_v63, %v241_v62  ;;  %v1830_v9 = vpack.c.bf16 %v239_v3, %v235_v1  ;;  %v243_v13 = vld [vmem:[#allocation5 + $0x3d0] sm:$0xff] }
  0xac   :  { %1619 = vmatpush1.bf16.msra.mxu0 %v1618_v10  ;;  %v248_v7 = vld [vmem:[#allocation5 + $0x3f8] sm:$0xff]  ;;  %v1640_v10 = vpack.c.bf16 %v254_v5, %v250_v4  ;;  %v247_v15 = vld [vmem:[#allocation5 + $0x3f0] sm:$0xff]  ;;  %v262_v17 = vld [vmem:[#allocation5 + $0x468] sm:$0xff] }
  0xad   :  { %1621 = vmatprep.subr.bf16.mxu0 %v1620_v12  ;;  %v253_v12 = vld [vmem:[#allocation5 + $0x420] sm:$0xff]  ;;  %v1832_v14 = vpack.c.bf16 %v248_v7, %v244_v6  ;;  %v252_v18 = vld [vmem:[#allocation5 + $0x418] sm:$0xff]  ;;  %v114_v20 = vld [vmem:[#allocation2] sm:$0xff]  ;;  %v1834_v22 = vpack.c.bf16 %v247_v15, %v243_v13 }
  0xae   :  { %1811 = vmatpush1.bf16.msra.mxu1 %v1810_v11  ;;  %v249_v11 = vld [vmem:[#allocation5 + $0x400] sm:$0xff]  ;;  %v256_v19 = vld [vmem:[#allocation5 + $0x438] sm:$0xff]  ;;  %v251_v26 = vld [vmem:[#allocation5 + $0x410] sm:$0xff] }
  0xaf   :  { %1813 = vmatprep.subr.bf16.mxu1 %v1812_v16  ;;  %v258_v16 = vld [vmem:[#allocation5 + $0x448] sm:$0xff]  ;;  %v1642_v21 = vpack.c.bf16 %v253_v12, %v249_v11  ;;  %v1836_v27 = vpack.c.bf16 %v256_v19, %v252_v18  ;;  %v255_v28 = vld [vmem:[#allocation5 + $0x430] sm:$0xff]  ;;  %v260_v31 = vld [vmem:[#allocation5 + $0x458] sm:$0xff] }
  0xb0   :  { %1623 = vmatpush1.bf16.msra.mxu0 %v1622_v23  ;;  %v1644_v23 = vpack.c.bf16 %v262_v17, %v258_v16  ;;  %v270_v30 = vld [vmem:[#allocation5 + $0x4a8] sm:$0xff]  ;;  %v264_v32 = vld [vmem:[#allocation5 + $0x478] sm:$0xff]  ;;  %v1838_v34 = vpack.c.bf16 %v255_v28, %v251_v26  ;;  %v259_v38 = vld [vmem:[#allocation5 + $0x450] sm:$0xff] }
  0xb1   :  { %1625 = vmatprep.subr.bf16.mxu0 %v1624_v25  ;;  %v261_v25 = vld [vmem:[#allocation5 + $0x460] sm:$0xff]  ;;  %v1840_v39 = vpack.c.bf16 %v264_v32, %v260_v31  ;;  %v263_v40 = vld [vmem:[#allocation5 + $0x470] sm:$0xff]  ;;  %v278_v42 = vld [vmem:[#allocation5 + $0x4e8] sm:$0xff] }
  0xb2   :  { %1815 = vmatpush1.bf16.msra.mxu1 %v1814_v24  ;;  %v257_v24 = vld [vmem:[#allocation5 + $0x440] sm:$0xff]  ;;  %v268_v43 = vld [vmem:[#allocation5 + $0x498] sm:$0xff]  ;;  %v1842_v46 = vpack.c.bf16 %v263_v40, %v259_v38  ;;  %v267_v50 = vld [vmem:[#allocation5 + $0x490] sm:$0xff] }
  0xb3   :  { %1817 = vmatprep.subr.bf16.mxu1 %v1816_v29  ;;  %v266_v29 = vld [vmem:[#allocation5 + $0x488] sm:$0xff]  ;;  %v1646_v33 = vpack.c.bf16 %v261_v25, %v257_v24  ;;  %v272_v44 = vld [vmem:[#allocation5 + $0x4b8] sm:$0xff]  ;;  %v271_v52 = vld [vmem:[#allocation5 + $0x4b0] sm:$0xff] }
  0xb4   :  { %1627 = vmatpush1.bf16.msra.mxu0 %v1626_v35  ;;  %v1648_v35 = vpack.c.bf16 %v270_v30, %v266_v29  ;;  %v1844_v51 = vpack.c.bf16 %v272_v44, %v268_v43  ;;  %v286_v54 = vld [vmem:[#allocation5 + $0x528] sm:$0xff]  ;;  %v276_v55 = vld [vmem:[#allocation5 + $0x4d8] sm:$0xff]  ;;  %v1846_v58 = vpack.c.bf16 %v271_v52, %v267_v50  ;;  %v275_v62 = vld [vmem:[#allocation5 + $0x4d0] sm:$0xff] }
  0xb5   :  { %1629 = vmatprep.subr.bf16.mxu0 %v1628_v37  ;;  %v269_v37 = vld [vmem:[#allocation5 + $0x4a0] sm:$0xff]  ;;  %v280_v56 = vld [vmem:[#allocation5 + $0x4f8] sm:$0xff]  ;;  %v279_v1 = vld [vmem:[#allocation5 + $0x4f0] sm:$0xff] }
  0xb6   :  { %1819 = vmatpush1.bf16.msra.mxu1 %v1818_v36  ;;  %v265_v36 = vld [vmem:[#allocation5 + $0x480] sm:$0xff]  ;;  %v1848_v63 = vpack.c.bf16 %v280_v56, %v276_v55  ;;  %v294_v3 = vld [vmem:[#allocation5 + $0x568] sm:$0xff]  ;;  %v284_v4 = vld [vmem:[#allocation5 + $0x518] sm:$0xff]  ;;  %v1850_v7 = vpack.c.bf16 %v279_v1, %v275_v62 }
  0xb7   :  { %1821 = vmatprep.subr.bf16.mxu1 %v1820_v41  ;;  %v274_v41 = vld [vmem:[#allocation5 + $0x4c8] sm:$0xff]  ;;  %v1650_v45 = vpack.c.bf16 %v269_v37, %v265_v36  ;;  %v288_v5 = vld [vmem:[#allocation5 + $0x538] sm:$0xff]  ;;  %v283_v11 = vld [vmem:[#allocation5 + $0x510] sm:$0xff] }
  0xb8   :  { %1631 = vmatpush1.bf16.msra.mxu0 %v1630_v47  ;;  %v1652_v47 = vpack.c.bf16 %v278_v42, %v274_v41  ;;  %v1852_v12 = vpack.c.bf16 %v288_v5, %v284_v4  ;;  %v287_v13 = vld [vmem:[#allocation5 + $0x530] sm:$0xff]  ;;  %v302_v15 = vld [vmem:[#allocation5 + $0x5a8] sm:$0xff]  ;;  %v292_v16 = vld [vmem:[#allocation5 + $0x558] sm:$0xff] }
  0xb9   :  { %1633 = vmatprep.subr.bf16.mxu0 %v1632_v49  ;;  %v277_v49 = vld [vmem:[#allocation5 + $0x4e0] sm:$0xff]  ;;  %v296_v17 = vld [vmem:[#allocation5 + $0x578] sm:$0xff]  ;;  %v295_v24 = vld [vmem:[#allocation5 + $0x570] sm:$0xff] }
  0xba   :  { %1823 = vmatpush1.bf16.msra.mxu1 %v1822_v48  ;;  %v273_v48 = vld [vmem:[#allocation5 + $0x4c0] sm:$0xff]  ;;  %v1856_v25 = vpack.c.bf16 %v296_v17, %v292_v16  ;;  %v306_v26 = vld [vmem:[#allocation5 + $0x5c8] sm:$0xff]  ;;  %v300_v29 = vld [vmem:[#allocation5 + $0x598] sm:$0xff] }
  0xbb   :  { %1825 = vmatprep.subr.bf16.mxu1 %v1824_v53  ;;  %v282_v53 = vld [vmem:[#allocation5 + $0x508] sm:$0xff]  ;;  %v1654_v57 = vpack.c.bf16 %v277_v49, %v273_v48  ;;  %v297_v19 = vld [vmem:[#allocation5 + $0x580] sm:$0xff]  ;;  %v304_v30 = vld [vmem:[#allocation5 + $0x5b8] sm:$0xff] }
  0xbc   :  { %1635 = vmatpush1.bf16.msra.mxu0 %v1634_v59  ;;  %v1656_v59 = vpack.c.bf16 %v286_v54, %v282_v53  ;;  %v117_v28 = vld [vmem:[#allocation2 + $0x18] sm:$0xff]  ;;  %v299_v36 = vld [vmem:[#allocation5 + $0x590] sm:$0xff]  ;;  %v1860_v37 = vpack.c.bf16 %v304_v30, %v300_v29  ;;  %v318_v40 = vld [vmem:[#allocation5 + $0x628] sm:$0xff] }
  0xbd   :  { %1637 = vmatprep.subr.bf16.mxu0 %v1636_v61  ;;  %v285_v61 = vld [vmem:[#allocation5 + $0x520] sm:$0xff]  ;;  %v303_v38 = vld [vmem:[#allocation5 + $0x5b0] sm:$0xff]  ;;  %v308_v41 = vld [vmem:[#allocation5 + $0x5d8] sm:$0xff] }
  0xbe   :  { %1827 = vmatpush1.bf16.msra.mxu1 %v1826_v60  ;;  %v281_v60 = vld [vmem:[#allocation5 + $0x500] sm:$0xff]  ;;  %v312_v42 = vld [vmem:[#allocation5 + $0x5f8] sm:$0xff]  ;;  %v1862_v44 = vpack.c.bf16 %v303_v38, %v299_v36  ;;  %v307_v48 = vld [vmem:[#allocation5 + $0x5d0] sm:$0xff] }
  0xbf   :  { %1829 = vmatprep.subr.bf16.mxu1 %v1828_v2  ;;  %v290_v2 = vld [vmem:[#allocation5 + $0x548] sm:$0xff]  ;;  %v1658_v6 = vpack.c.bf16 %v285_v61, %v281_v60  ;;  %v1864_v49 = vpack.c.bf16 %v312_v42, %v308_v41  ;;  %v311_v50 = vld [vmem:[#allocation5 + $0x5f0] sm:$0xff]  ;;  %v316_v53 = vld [vmem:[#allocation5 + $0x618] sm:$0xff] }
  0xc0   :  { %1639 = vmatpush1.bf16.msra.mxu0 %v1638_v8  ;;  %v1660_v8 = vpack.c.bf16 %v294_v3, %v290_v2  ;;  %v326_v52 = vld [vmem:[#allocation5 + $0x668] sm:$0xff]  ;;  %v320_v54 = vld [vmem:[#allocation5 + $0x638] sm:$0xff]  ;;  %v1866_v56 = vpack.c.bf16 %v311_v50, %v307_v48  ;;  %v315_v60 = vld [vmem:[#allocation5 + $0x610] sm:$0xff] }
  0xc1   :  { %1641 = vmatprep.subr.bf16.mxu0 %v1640_v10  ;;  %v293_v10 = vld [vmem:[#allocation5 + $0x560] sm:$0xff]  ;;  %v1868_v61 = vpack.c.bf16 %v320_v54, %v316_v53  ;;  %v319_v62 = vld [vmem:[#allocation5 + $0x630] sm:$0xff]  ;;  %v334_v1 = vld [vmem:[#allocation5 + $0x6a8] sm:$0xff] }
  0xc2   :  { %1831 = vmatpush1.bf16.msra.mxu1 %v1830_v9  ;;  %v289_v9 = vld [vmem:[#allocation5 + $0x540] sm:$0xff]  ;;  %v324_v2 = vld [vmem:[#allocation5 + $0x658] sm:$0xff]  ;;  %v1870_v5 = vpack.c.bf16 %v319_v62, %v315_v60  ;;  %v354_v36 = vld [vmem:[#allocation5 + $0x748] sm:$0xff] }
  0xc3   :  { %1833 = vmatprep.subr.bf16.mxu1 %v1832_v14  ;;  %604 = vmatmul.mubr.f32.vlgmr.msra.gmra.mrb[0].mxu0 %v114_v20  ;;  %v298_v14 = vld [vmem:[#allocation5 + $0x588] sm:$0xff]  ;;  %v1662_v18 = vpack.c.bf16 %v293_v10, %v289_v9  ;;  %v328_v3 = vld [vmem:[#allocation5 + $0x678] sm:$0xff]  ;;  %v323_v9 = vld [vmem:[#allocation5 + $0x650] sm:$0xff] }
  0xc4   :  { %1643 = vmatpush1.bf16.msra.mxu0 %v1642_v21  ;;  %v1664_v21 = vpack.c.bf16 %v302_v15, %v298_v14  ;;  %674 = vmatprep.mubr.f32.mxu0 %v117_v28  ;;  %v1872_v10 = vpack.c.bf16 %v328_v3, %v324_v2  ;;  %v332_v14 = vld [vmem:[#allocation5 + $0x698] sm:$0xff]  ;;  %v362_v48 = vld [vmem:[#allocation5 + $0x788] sm:$0xff] }
  0xc5   :  { %1645 = vmatprep.subr.bf16.mxu0 %v1644_v23  ;;  %v291_v23 = vld [vmem:[#allocation5 + $0x550] sm:$0xff]  ;;  %v336_v15 = vld [vmem:[#allocation5 + $0x6b8] sm:$0xff]  ;;  %v370_v60 = vld [vmem:[#allocation5 + $0x7c8] sm:$0xff] }
  0xc6   :  { %1835 = vmatpush1.bf16.msra.mxu1 %v1834_v22  ;;  %v301_v22 = vld [vmem:[#allocation5 + $0x5a0] sm:$0xff]  ;;  %v1858_v32 = vpack.c.bf16 %v295_v24, %v291_v23  ;;  %v335_v23 = vld [vmem:[#allocation5 + $0x6b0] sm:$0xff]  ;;  %v346_v24 = vld [vmem:[#allocation5 + $0x708] sm:$0xff] }
  0xc7   :  { %1837 = vmatprep.subr.bf16.mxu1 %v1836_v27  ;;  %v310_v27 = vld [vmem:[#allocation5 + $0x5e8] sm:$0xff]  ;;  %v1666_v31 = vpack.c.bf16 %v301_v22, %v297_v19  ;;  %v337_v19 = vld [vmem:[#allocation5 + $0x6c0] sm:$0xff]  ;;  %v1876_v22 = vpack.c.bf16 %v336_v15, %v332_v14  ;;  %v348_v38 = vld [vmem:[#allocation5 + $0x718] sm:$0xff] }
  0xc8   :  { %1647 = vmatpush1.bf16.msra.mxu0 %v1646_v33  ;;  %v1668_v33 = vpack.c.bf16 %v310_v27, %v306_v26  ;;  %v340_v26 = vld [vmem:[#allocation5 + $0x6d8] sm:$0xff] }
  0xc9   :  { %888 = vmatmul.mubr.f32.vlgmr.msra.gmra.mrb[2].mxu1 %v114_v20  ;;  %1649 = vmatprep.subr.bf16.mxu0 %v1648_v35  ;;  %v1854_v20 = vpack.c.bf16 %v287_v13, %v283_v11  ;;  %v309_v35 = vld [vmem:[#allocation5 + $0x5e0] sm:$0xff]  ;;  %v327_v11 = vld [vmem:[#allocation5 + $0x670] sm:$0xff]  ;;  %v342_v13 = vld [vmem:[#allocation5 + $0x6e8] sm:$0xff] }
  0xca   :  { %1839 = vmatpush1.bf16.msra.mxu1 %v1838_v34  ;;  %958 = vmatprep.mubr.f32.mxu1 %v117_v28  ;;  %v305_v34 = vld [vmem:[#allocation5 + $0x5c0] sm:$0xff]  ;;  %v1874_v17 = vpack.c.bf16 %v327_v11, %v323_v9  ;;  %v344_v27 = vld [vmem:[#allocation5 + $0x6f8] sm:$0xff]  ;;  %v378_v9 = vld [vmem:[#allocation5 + $0x808] sm:$0xff] }
  0xcb   :  { %1841 = vmatprep.subr.bf16.mxu1 %v1840_v39  ;;  %v314_v39 = vld [vmem:[#allocation5 + $0x608] sm:$0xff]  ;;  %v1670_v43 = vpack.c.bf16 %v309_v35, %v305_v34  ;;  %v1880_v34 = vpack.c.bf16 %v344_v27, %v340_v26  ;;  %v343_v35 = vld [vmem:[#allocation5 + $0x6f0] sm:$0xff]  ;;  %v356_v50 = vld [vmem:[#allocation5 + $0x758] sm:$0xff] }
  0xcc   :  { %1651 = vmatpush1.bf16.msra.mxu0 %v1650_v45  ;;  %v1672_v45 = vpack.c.bf16 %v318_v40, %v314_v39  ;;  %v352_v39 = vld [vmem:[#allocation5 + $0x738] sm:$0xff]  ;;  %v385_v27 = vld [vmem:[#allocation5 + $0x840] sm:$0xff] }
  0xcd   :  { %1653 = vmatprep.subr.bf16.mxu0 %v1652_v47  ;;  %v317_v47 = vld [vmem:[#allocation5 + $0x620] sm:$0xff]  ;;  %v364_v62 = vld [vmem:[#allocation5 + $0x798] sm:$0xff] }
  0xce   :  { %1843 = vmatpush1.bf16.msra.mxu1 %v1842_v46  ;;  %v313_v46 = vld [vmem:[#allocation5 + $0x600] sm:$0xff]  ;;  %v372_v11 = vld [vmem:[#allocation5 + $0x7d8] sm:$0xff] }
  0xcf   :  { %1845 = vmatprep.subr.bf16.mxu1 %v1844_v51  ;;  %v322_v51 = vld [vmem:[#allocation5 + $0x648] sm:$0xff]  ;;  %v1674_v55 = vpack.c.bf16 %v317_v47, %v313_v46  ;;  %v1884_v46 = vpack.c.bf16 %v352_v39, %v348_v38  ;;  %v351_v47 = vld [vmem:[#allocation5 + $0x730] sm:$0xff]  ;;  %v392_v38 = vld [vmem:[#allocation5 + $0x878] sm:$0xff] }
  0xd0   :  { %1655 = vmatpush1.bf16.msra.mxu0 %v1654_v57  ;;  %v1676_v57 = vpack.c.bf16 %v326_v52, %v322_v51  ;;  %v360_v51 = vld [vmem:[#allocation5 + $0x778] sm:$0xff] }
  0xd1   :  { %1657 = vmatprep.subr.bf16.mxu0 %v1656_v59  ;;  %v325_v59 = vld [vmem:[#allocation5 + $0x660] sm:$0xff] }
  0xd2   :  { %1847 = vmatpush1.bf16.msra.mxu1 %v1846_v58  ;;  %v321_v58 = vld [vmem:[#allocation5 + $0x640] sm:$0xff] }
  0xd3   :  { %1849 = vmatprep.subr.bf16.mxu1 %v1848_v63  ;;  %v330_v63 = vld [vmem:[#allocation5 + $0x688] sm:$0xff]  ;;  %v1678_v4 = vpack.c.bf16 %v325_v59, %v321_v58  ;;  %v1888_v58 = vpack.c.bf16 %v360_v51, %v356_v50  ;;  %v359_v59 = vld [vmem:[#allocation5 + $0x770] sm:$0xff]  ;;  %v400_v50 = vld [vmem:[#allocation5 + $0x8b8] sm:$0xff] }
  0xd4   :  { %1659 = vmatpush1.bf16.msra.mxu0 %v1658_v6  ;;  %v1680_v6 = vpack.c.bf16 %v334_v1, %v330_v63  ;;  %v368_v63 = vld [vmem:[#allocation5 + $0x7b8] sm:$0xff] }
  0xd5   :  { %1661 = vmatprep.subr.bf16.mxu0 %v1660_v8  ;;  %v333_v8 = vld [vmem:[#allocation5 + $0x6a0] sm:$0xff] }
  0xd6   :  { %1851 = vmatpush1.bf16.msra.mxu1 %v1850_v7  ;;  %v329_v7 = vld [vmem:[#allocation5 + $0x680] sm:$0xff] }
  0xd7   :  { %1853 = vmatprep.subr.bf16.mxu1 %v1852_v12  ;;  %v338_v12 = vld [vmem:[#allocation5 + $0x6c8] sm:$0xff]  ;;  %v1682_v16 = vpack.c.bf16 %v333_v8, %v329_v7  ;;  %v1892_v7 = vpack.c.bf16 %v368_v63, %v364_v62  ;;  %v367_v8 = vld [vmem:[#allocation5 + $0x7b0] sm:$0xff]  ;;  %v408_v62 = vld [vmem:[#allocation5 + $0x8f8] sm:$0xff] }
  0xd8   :  { %1663 = vmatpush1.bf16.msra.mxu0 %v1662_v18  ;;  %v1684_v18 = vpack.c.bf16 %v342_v13, %v338_v12  ;;  %v376_v12 = vld [vmem:[#allocation5 + $0x7f8] sm:$0xff] }
  0xd9   :  { %1665 = vmatprep.subr.bf16.mxu0 %v1664_v21  ;;  %v331_v21 = vld [vmem:[#allocation5 + $0x690] sm:$0xff] }
  0xda   :  { %1855 = vmatpush1.bf16.msra.mxu1 %v1854_v20  ;;  %v341_v20 = vld [vmem:[#allocation5 + $0x6e0] sm:$0xff]  ;;  %v1878_v29 = vpack.c.bf16 %v335_v23, %v331_v21  ;;  %v386_v21 = vld [vmem:[#allocation5 + $0x848] sm:$0xff]  ;;  %v380_v23 = vld [vmem:[#allocation5 + $0x818] sm:$0xff] }
  0xdb   :  { %1857 = vmatprep.subr.bf16.mxu1 %v1856_v25  ;;  %v350_v25 = vld [vmem:[#allocation5 + $0x728] sm:$0xff]  ;;  %v1686_v28 = vpack.c.bf16 %v341_v20, %v337_v19  ;;  %v1896_v19 = vpack.c.bf16 %v376_v12, %v372_v11  ;;  %v375_v20 = vld [vmem:[#allocation5 + $0x7f0] sm:$0xff]  ;;  %v416_v11 = vld [vmem:[#allocation5 + $0x938] sm:$0xff] }
  0xdc   :  { %1667 = vmatpush1.bf16.msra.mxu0 %v1666_v31  ;;  %v1688_v30 = vpack.c.bf16 %v350_v25, %v346_v24  ;;  %v345_v31 = vld [vmem:[#allocation5 + $0x700] sm:$0xff]  ;;  %v384_v24 = vld [vmem:[#allocation5 + $0x838] sm:$0xff] }
  0xdd   :  { %1669 = vmatprep.subr.bf16.mxu0 %v1668_v33  ;;  %v339_v33 = vld [vmem:[#allocation5 + $0x6d0] sm:$0xff]  ;;  %v116_v25 = vld [vmem:[#allocation2 + $0x10] sm:$0xff] }
  0xde   :  { %1859 = vmatpush1.bf16.msra.mxu1 %v1858_v32  ;;  %v349_v32 = vld [vmem:[#allocation5 + $0x720] sm:$0xff]  ;;  %v1882_v41 = vpack.c.bf16 %v343_v35, %v339_v33  ;;  %v1900_v33 = vpack.c.bf16 %v384_v24, %v380_v23  ;;  %v394_v35 = vld [vmem:[#allocation5 + $0x888] sm:$0xff]  ;;  %v424_v23 = vld [vmem:[#allocation5 + $0x978] sm:$0xff] }
  0xdf   :  { %1861 = vmatprep.subr.bf16.mxu1 %v1860_v37  ;;  %v358_v37 = vld [vmem:[#allocation5 + $0x768] sm:$0xff]  ;;  %v1690_v40 = vpack.c.bf16 %v349_v32, %v345_v31  ;;  %v379_v31 = vld [vmem:[#allocation5 + $0x810] sm:$0xff] }
  0xe0   :  { %1671 = vmatpush1.bf16.msra.mxu0 %v1670_v43  ;;  %v1692_v42 = vpack.c.bf16 %v358_v37, %v354_v36  ;;  %v353_v43 = vld [vmem:[#allocation5 + $0x740] sm:$0xff]  ;;  %v119_v32 = vld [vmem:[#allocation2 + $0x28] sm:$0xff]  ;;  %v398_v36 = vld [vmem:[#allocation5 + $0x8a8] sm:$0xff] }
  0xe1   :  { %1673 = vmatprep.subr.bf16.mxu0 %v1672_v45  ;;  %v347_v45 = vld [vmem:[#allocation5 + $0x710] sm:$0xff]  ;;  %v388_v37 = vld [vmem:[#allocation5 + $0x858] sm:$0xff] }
  0xe2   :  { %1863 = vmatpush1.bf16.msra.mxu1 %v1862_v44  ;;  %v357_v44 = vld [vmem:[#allocation5 + $0x760] sm:$0xff]  ;;  %v1886_v53 = vpack.c.bf16 %v351_v47, %v347_v45  ;;  %v1904_v45 = vpack.c.bf16 %v392_v38, %v388_v37  ;;  %v402_v47 = vld [vmem:[#allocation5 + $0x8c8] sm:$0xff] }
  0xe3   :  { %1865 = vmatprep.subr.bf16.mxu1 %v1864_v49  ;;  %v366_v49 = vld [vmem:[#allocation5 + $0x7a8] sm:$0xff]  ;;  %v1694_v52 = vpack.c.bf16 %v357_v44, %v353_v43  ;;  %v397_v43 = vld [vmem:[#allocation5 + $0x8a0] sm:$0xff]  ;;  %v387_v44 = vld [vmem:[#allocation5 + $0x850] sm:$0xff] }
  0xe4   :  { %1675 = vmatpush1.bf16.msra.mxu0 %v1674_v55  ;;  %v1696_v54 = vpack.c.bf16 %v366_v49, %v362_v48  ;;  %v361_v55 = vld [vmem:[#allocation5 + $0x780] sm:$0xff]  ;;  %v406_v48 = vld [vmem:[#allocation5 + $0x8e8] sm:$0xff]  ;;  %v396_v49 = vld [vmem:[#allocation5 + $0x898] sm:$0xff] }
  0xe5   :  { %1677 = vmatprep.subr.bf16.mxu0 %v1676_v57  ;;  %v355_v57 = vld [vmem:[#allocation5 + $0x750] sm:$0xff] }
  0xe6   :  { %1867 = vmatpush1.bf16.msra.mxu1 %v1866_v56  ;;  %v365_v56 = vld [vmem:[#allocation5 + $0x7a0] sm:$0xff]  ;;  %v1890_v2 = vpack.c.bf16 %v359_v59, %v355_v57  ;;  %v1908_v57 = vpack.c.bf16 %v400_v50, %v396_v49  ;;  %v410_v59 = vld [vmem:[#allocation5 + $0x908] sm:$0xff] }
  0xe7   :  { %1869 = vmatprep.subr.bf16.mxu1 %v1868_v61  ;;  %v374_v61 = vld [vmem:[#allocation5 + $0x7e8] sm:$0xff]  ;;  %v1698_v1 = vpack.c.bf16 %v365_v56, %v361_v55  ;;  %v405_v55 = vld [vmem:[#allocation5 + $0x8e0] sm:$0xff]  ;;  %v395_v56 = vld [vmem:[#allocation5 + $0x890] sm:$0xff] }
  0xe8   :  { %1679 = vmatpush1.bf16.msra.mxu0 %v1678_v4  ;;  %v1700_v3 = vpack.c.bf16 %v374_v61, %v370_v60  ;;  %v369_v4 = vld [vmem:[#allocation5 + $0x7c0] sm:$0xff]  ;;  %v414_v60 = vld [vmem:[#allocation5 + $0x928] sm:$0xff]  ;;  %v404_v61 = vld [vmem:[#allocation5 + $0x8d8] sm:$0xff] }
  0xe9   :  { %1681 = vmatprep.subr.bf16.mxu0 %v1680_v6  ;;  %v363_v6 = vld [vmem:[#allocation5 + $0x790] sm:$0xff] }
  0xea   :  { %1871 = vmatpush1.bf16.msra.mxu1 %v1870_v5  ;;  %v373_v5 = vld [vmem:[#allocation5 + $0x7e0] sm:$0xff]  ;;  %v1894_v14 = vpack.c.bf16 %v367_v8, %v363_v6  ;;  %v1912_v6 = vpack.c.bf16 %v408_v62, %v404_v61  ;;  %v418_v8 = vld [vmem:[#allocation5 + $0x948] sm:$0xff] }
  0xeb   :  { %1873 = vmatprep.subr.bf16.mxu1 %v1872_v10  ;;  %v382_v10 = vld [vmem:[#allocation5 + $0x828] sm:$0xff]  ;;  %v1702_v13 = vpack.c.bf16 %v373_v5, %v369_v4  ;;  %v413_v4 = vld [vmem:[#allocation5 + $0x920] sm:$0xff]  ;;  %v403_v5 = vld [vmem:[#allocation5 + $0x8d0] sm:$0xff] }
  0xec   :  { %1683 = vmatpush1.bf16.msra.mxu0 %v1682_v16  ;;  %v1704_v15 = vpack.c.bf16 %v382_v10, %v378_v9  ;;  %v377_v16 = vld [vmem:[#allocation5 + $0x800] sm:$0xff]  ;;  %v422_v9 = vld [vmem:[#allocation5 + $0x968] sm:$0xff]  ;;  %v412_v10 = vld [vmem:[#allocation5 + $0x918] sm:$0xff] }
  0xed   :  { %1685 = vmatprep.subr.bf16.mxu0 %v1684_v18  ;;  %v371_v18 = vld [vmem:[#allocation5 + $0x7d0] sm:$0xff] }
  0xee   :  { %1875 = vmatpush1.bf16.msra.mxu1 %v1874_v17  ;;  %v381_v17 = vld [vmem:[#allocation5 + $0x820] sm:$0xff] }
  0xef   :  { %1877 = vmatprep.subr.bf16.mxu1 %v1876_v22  ;;  %v390_v22 = vld [vmem:[#allocation5 + $0x868] sm:$0xff]  ;;  %v1706_v26 = vpack.c.bf16 %v381_v17, %v377_v16  ;;  %v421_v16 = vld [vmem:[#allocation5 + $0x960] sm:$0xff]  ;;  %v411_v17 = vld [vmem:[#allocation5 + $0x910] sm:$0xff] }
  0xf0   :  { %1687 = vmatpush1.bf16.msra.mxu0 %v1686_v28  ;;  %v1898_v28 = vpack.c.bf16 %v375_v20, %v371_v18  ;;  %v1916_v18 = vpack.c.bf16 %v416_v11, %v412_v10  ;;  %v426_v20 = vld [vmem:[#allocation5 + $0x988] sm:$0xff] }
  0xf1   :  { %1689 = vmatprep.subr.bf16.mxu0 %v1688_v30  ;;  %v389_v30 = vld [vmem:[#allocation5 + $0x860] sm:$0xff] }
  0xf2   :  { %1879 = vmatpush1.bf16.msra.mxu1 %v1878_v29  ;;  %v1708_v29 = vpack.c.bf16 %v390_v22, %v386_v21  ;;  %v1710_v39 = vpack.c.bf16 %v389_v30, %v385_v27  ;;  %v430_v21 = vld [vmem:[#allocation5 + $0x9a8] sm:$0xff]  ;;  %v420_v22 = vld [vmem:[#allocation5 + $0x958] sm:$0xff]  ;;  %v425_v27 = vld [vmem:[#allocation5 + $0x980] sm:$0xff] }
  0xf3   :  { %1881 = vmatprep.subr.bf16.mxu1 %v1880_v34  ;;  %v383_v34 = vld [vmem:[#allocation5 + $0x830] sm:$0xff]  ;;  %v1920_v30 = vpack.c.bf16 %v424_v23, %v420_v22 }
  0xf4   :  { %1691 = vmatpush1.bf16.msra.mxu0 %v1690_v40  ;;  %v1902_v40 = vpack.c.bf16 %v383_v34, %v379_v31  ;;  %v423_v31 = vld [vmem:[#allocation5 + $0x970] sm:$0xff]  ;;  %v428_v34 = vld [vmem:[#allocation5 + $0x998] sm:$0xff] }
  0xf5   :  { %1693 = vmatprep.subr.bf16.mxu0 %v1692_v42  ;;  %v393_v42 = vld [vmem:[#allocation5 + $0x880] sm:$0xff] }
  0xf6   :  { %1883 = vmatpush1.bf16.msra.mxu1 %v1882_v41  ;;  %v1712_v41 = vpack.c.bf16 %v398_v36, %v394_v35  ;;  %v1714_v51 = vpack.c.bf16 %v397_v43, %v393_v42  ;;  %v432_v35 = vld [vmem:[#allocation5 + $0x9b8] sm:$0xff]  ;;  %v431_v43 = vld [vmem:[#allocation5 + $0x9b0] sm:$0xff] }
  0xf7   :  { %1885 = vmatprep.subr.bf16.mxu1 %v1884_v46  ;;  %v391_v46 = vld [vmem:[#allocation5 + $0x870] sm:$0xff]  ;;  %v1924_v42 = vpack.c.bf16 %v432_v35, %v428_v34 }
  0xf8   :  { %1695 = vmatpush1.bf16.msra.mxu0 %v1694_v52  ;;  %v1906_v52 = vpack.c.bf16 %v391_v46, %v387_v44  ;;  %v442_v44 = vld [vmem:[#allocation5 + $0xa08] sm:$0xff]  ;;  %v436_v46 = vld [vmem:[#allocation5 + $0x9d8] sm:$0xff] }
  0xf9   :  { %1697 = vmatprep.subr.bf16.mxu0 %v1696_v54  ;;  %v401_v54 = vld [vmem:[#allocation5 + $0x8c0] sm:$0xff] }
  0xfa   :  { %1887 = vmatpush1.bf16.msra.mxu1 %v1886_v53  ;;  %v1716_v53 = vpack.c.bf16 %v406_v48, %v402_v47  ;;  %v1718_v63 = vpack.c.bf16 %v405_v55, %v401_v54  ;;  %v440_v47 = vld [vmem:[#allocation5 + $0x9f8] sm:$0xff]  ;;  %v439_v55 = vld [vmem:[#allocation5 + $0x9f0] sm:$0xff] }
  0xfb   :  { %1889 = vmatprep.subr.bf16.mxu1 %v1888_v58  ;;  %v399_v58 = vld [vmem:[#allocation5 + $0x8b0] sm:$0xff]  ;;  %v1928_v54 = vpack.c.bf16 %v440_v47, %v436_v46 }
  0xfc   :  { %1699 = vmatpush1.bf16.msra.mxu0 %v1698_v1  ;;  %v1910_v1 = vpack.c.bf16 %v399_v58, %v395_v56  ;;  %v450_v56 = vld [vmem:[#allocation5 + $0xa48] sm:$0xff]  ;;  %v444_v58 = vld [vmem:[#allocation5 + $0xa18] sm:$0xff] }
  0xfd   :  { %1701 = vmatprep.subr.bf16.mxu0 %v1700_v3  ;;  %v409_v3 = vld [vmem:[#allocation5 + $0x900] sm:$0xff] }
  0xfe   :  { %1891 = vmatpush1.bf16.msra.mxu1 %v1890_v2  ;;  %v1720_v2 = vpack.c.bf16 %v414_v60, %v410_v59  ;;  %v1722_v12 = vpack.c.bf16 %v413_v4, %v409_v3  ;;  %v448_v59 = vld [vmem:[#allocation5 + $0xa38] sm:$0xff]  ;;  %v447_v4 = vld [vmem:[#allocation5 + $0xa30] sm:$0xff] }
  0xff   :  { %1893 = vmatprep.subr.bf16.mxu1 %v1892_v7  ;;  %v407_v7 = vld [vmem:[#allocation5 + $0x8f0] sm:$0xff]  ;;  %v1932_v3 = vpack.c.bf16 %v448_v59, %v444_v58 }
 0x100   :  { %1703 = vmatpush1.bf16.msra.mxu0 %v1702_v13  ;;  %v1914_v13 = vpack.c.bf16 %v407_v7, %v403_v5  ;;  %v458_v5 = vld [vmem:[#allocation5 + $0xa88] sm:$0xff]  ;;  %v452_v7 = vld [vmem:[#allocation5 + $0xa58] sm:$0xff] }
 0x101   :  { %1705 = vmatprep.subr.bf16.mxu0 %v1704_v15  ;;  %v417_v15 = vld [vmem:[#allocation5 + $0x940] sm:$0xff] }
 0x102   :  { %1895 = vmatpush1.bf16.msra.mxu1 %v1894_v14  ;;  %v1724_v14 = vpack.c.bf16 %v422_v9, %v418_v8  ;;  %v1726_v24 = vpack.c.bf16 %v421_v16, %v417_v15  ;;  %v456_v8 = vld [vmem:[#allocation5 + $0xa78] sm:$0xff]  ;;  %v455_v16 = vld [vmem:[#allocation5 + $0xa70] sm:$0xff] }
 0x103   :  { %1897 = vmatprep.subr.bf16.mxu1 %v1896_v19  ;;  %675 = vmatmul.mubr.f32.vlgmr.msra.gmra.mrb[0].mxu0 %v116_v25  ;;  %v415_v19 = vld [vmem:[#allocation5 + $0x930] sm:$0xff]  ;;  %v1936_v15 = vpack.c.bf16 %v456_v8, %v452_v7 }
 0x104   :  { %1707 = vmatpush1.bf16.msra.mxu0 %v1706_v26  ;;  %745 = vmatprep.mubr.f32.mxu0 %v119_v32  ;;  %v1728_v26 = vpack.c.bf16 %v430_v21, %v426_v20  ;;  %v464_v20 = vld [vmem:[#allocation5 + $0xab8] sm:$0xff] }
 0x105   :  { %1709 = vmatprep.subr.bf16.mxu0 %v1708_v29  ;;  %v419_v29 = vld [vmem:[#allocation5 + $0x950] sm:$0xff] }
 0x106   :  { %1899 = vmatpush1.bf16.msra.mxu1 %v1898_v28  ;;  %v429_v28 = vld [vmem:[#allocation5 + $0x9a0] sm:$0xff]  ;;  %v1922_v37 = vpack.c.bf16 %v423_v31, %v419_v29  ;;  %v474_v29 = vld [vmem:[#allocation5 + $0xb08] sm:$0xff]  ;;  %v468_v31 = vld [vmem:[#allocation5 + $0xad8] sm:$0xff] }
 0x107   :  { %1901 = vmatprep.subr.bf16.mxu1 %v1900_v33  ;;  %v438_v33 = vld [vmem:[#allocation5 + $0x9e8] sm:$0xff]  ;;  %v1730_v36 = vpack.c.bf16 %v429_v28, %v425_v27  ;;  %v463_v28 = vld [vmem:[#allocation5 + $0xab0] sm:$0xff] }
 0x108   :  { %1711 = vmatpush1.bf16.msra.mxu0 %v1710_v39  ;;  %v433_v39 = vld [vmem:[#allocation5 + $0x9c0] sm:$0xff] }
 0x109   :  { %959 = vmatmul.mubr.f32.vlgmr.msra.gmra.mrb[2].mxu1 %v116_v25  ;;  %1713 = vmatprep.subr.bf16.mxu0 %v1712_v41  ;;  %v1918_v25 = vpack.c.bf16 %v415_v19, %v411_v17  ;;  %v427_v41 = vld [vmem:[#allocation5 + $0x990] sm:$0xff]  ;;  %v466_v17 = vld [vmem:[#allocation5 + $0xac8] sm:$0xff]  ;;  %v460_v19 = vld [vmem:[#allocation5 + $0xa98] sm:$0xff] }
 0x10a   :  { %1903 = vmatpush1.bf16.msra.mxu1 %v1902_v40  ;;  %1029 = vmatprep.mubr.f32.mxu1 %v119_v32  ;;  %v434_v32 = vld [vmem:[#allocation5 + $0x9c8] sm:$0xff]  ;;  %v437_v40 = vld [vmem:[#allocation5 + $0x9e0] sm:$0xff]  ;;  %v1926_v49 = vpack.c.bf16 %v431_v43, %v427_v41  ;;  %v1940_v27 = vpack.c.bf16 %v464_v20, %v460_v19  ;;  %v476_v43 = vld [vmem:[#allocation5 + $0xb18] sm:$0xff] }
 0x10b   :  { %1905 = vmatprep.subr.bf16.mxu1 %v1904_v45  ;;  %v1732_v38 = vpack.c.bf16 %v438_v33, %v434_v32  ;;  %v446_v45 = vld [vmem:[#allocation5 + $0xa28] sm:$0xff]  ;;  %v1734_v48 = vpack.c.bf16 %v437_v40, %v433_v39  ;;  %v472_v32 = vld [vmem:[#allocation5 + $0xaf8] sm:$0xff]  ;;  %v471_v40 = vld [vmem:[#allocation5 + $0xaf0] sm:$0xff] }
 0x10c   :  { %1715 = vmatpush1.bf16.msra.mxu0 %v1714_v51  ;;  %v1736_v50 = vpack.c.bf16 %v446_v45, %v442_v44  ;;  %v441_v51 = vld [vmem:[#allocation5 + $0xa00] sm:$0xff]  ;;  %v1944_v39 = vpack.c.bf16 %v472_v32, %v468_v31  ;;  %v482_v41 = vld [vmem:[#allocation5 + $0xb48] sm:$0xff]  ;;  %v480_v44 = vld [vmem:[#allocation5 + $0xb38] sm:$0xff] }
 0x10d   :  { %1717 = vmatprep.subr.bf16.mxu0 %v1716_v53  ;;  %v435_v53 = vld [vmem:[#allocation5 + $0x9d0] sm:$0xff] }
 0x10e   :  { %1907 = vmatpush1.bf16.msra.mxu1 %v1906_v52  ;;  %v445_v52 = vld [vmem:[#allocation5 + $0xa20] sm:$0xff]  ;;  %v1930_v61 = vpack.c.bf16 %v439_v55, %v435_v53  ;;  %v490_v53 = vld [vmem:[#allocation5 + $0xb88] sm:$0xff]  ;;  %v484_v55 = vld [vmem:[#allocation5 + $0xb58] sm:$0xff] }
 0x10f   :  { %1909 = vmatprep.subr.bf16.mxu1 %v1908_v57  ;;  %v454_v57 = vld [vmem:[#allocation5 + $0xa68] sm:$0xff]  ;;  %v1738_v60 = vpack.c.bf16 %v445_v52, %v441_v51  ;;  %v1948_v51 = vpack.c.bf16 %v480_v44, %v476_v43  ;;  %v479_v52 = vld [vmem:[#allocation5 + $0xb30] sm:$0xff] }
 0x110   :  { %1719 = vmatpush1.bf16.msra.mxu0 %v1718_v63  ;;  %v1740_v62 = vpack.c.bf16 %v454_v57, %v450_v56  ;;  %v449_v63 = vld [vmem:[#allocation5 + $0xa40] sm:$0xff]  ;;  %v488_v56 = vld [vmem:[#allocation5 + $0xb78] sm:$0xff]  ;;  %v499_v20 = vld [vmem:[#allocation5 + $0xbd0] sm:$0xff] }
 0x111   :  { %1721 = vmatprep.subr.bf16.mxu0 %v1720_v2  ;;  %v443_v2 = vld [vmem:[#allocation5 + $0xa10] sm:$0xff]  ;;  %v1143_v44 = vld [vmem:[#allocation8 + $0xa0] sm:$0xff] }
 0x112   :  { %1911 = vmatpush1.bf16.msra.mxu1 %v1910_v1  ;;  %v453_v1 = vld [vmem:[#allocation5 + $0xa60] sm:$0xff]  ;;  %v1934_v10 = vpack.c.bf16 %v447_v4, %v443_v2  ;;  %v498_v2 = vld [vmem:[#allocation5 + $0xbc8] sm:$0xff]  ;;  %v492_v4 = vld [vmem:[#allocation5 + $0xb98] sm:$0xff] }
 0x113   :  { %1913 = vmatprep.subr.bf16.mxu1 %v1912_v6  ;;  %v462_v6 = vld [vmem:[#allocation5 + $0xaa8] sm:$0xff]  ;;  %v1742_v9 = vpack.c.bf16 %v453_v1, %v449_v63  ;;  %v1952_v63 = vpack.c.bf16 %v488_v56, %v484_v55  ;;  %v487_v1 = vld [vmem:[#allocation5 + $0xb70] sm:$0xff] }
 0x114   :  { %1723 = vmatpush1.bf16.msra.mxu0 %v1722_v12  ;;  %v1744_v11 = vpack.c.bf16 %v462_v6, %v458_v5  ;;  %v457_v12 = vld [vmem:[#allocation5 + $0xa80] sm:$0xff]  ;;  %v496_v5 = vld [vmem:[#allocation5 + $0xbb8] sm:$0xff] }
 0x115   :  { %1725 = vmatprep.subr.bf16.mxu0 %v1724_v14  ;;  %v451_v14 = vld [vmem:[#allocation5 + $0xa50] sm:$0xff] }
 0x116   :  { %1915 = vmatpush1.bf16.msra.mxu1 %v1914_v13  ;;  %v461_v13 = vld [vmem:[#allocation5 + $0xaa0] sm:$0xff]  ;;  %v1938_v22 = vpack.c.bf16 %v455_v16, %v451_v14  ;;  %v500_v16 = vld [vmem:[#allocation5 + $0xbd8] sm:$0xff] }
 0x117   :  { %1917 = vmatprep.subr.bf16.mxu1 %v1916_v18  ;;  %v470_v18 = vld [vmem:[#allocation5 + $0xae8] sm:$0xff]  ;;  %v1746_v21 = vpack.c.bf16 %v461_v13, %v457_v12  ;;  %v1956_v12 = vpack.c.bf16 %v496_v5, %v492_v4  ;;  %v495_v13 = vld [vmem:[#allocation5 + $0xbb0] sm:$0xff] }
 0x118   :  { %1727 = vmatpush1.bf16.msra.mxu0 %v1726_v24  ;;  %v1748_v23 = vpack.c.bf16 %v470_v18, %v466_v17  ;;  %v465_v24 = vld [vmem:[#allocation5 + $0xac0] sm:$0xff]  ;;  %v504_v17 = vld [vmem:[#allocation5 + $0xbf8] sm:$0xff] }
 0x119   :  { %1729 = vmatprep.subr.bf16.mxu0 %v1728_v26  ;;  %v459_v26 = vld [vmem:[#allocation5 + $0xa90] sm:$0xff]  ;;  %v1139_v14 = vld [vmem:[#allocation8 + $0x80] sm:$0xff] }
 0x11a   :  { %1919 = vmatpush1.bf16.msra.mxu1 %v1918_v25  ;;  %v469_v25 = vld [vmem:[#allocation5 + $0xae0] sm:$0xff]  ;;  %v1942_v34 = vpack.c.bf16 %v463_v28, %v459_v26  ;;  %v1141_v26 = vld [vmem:[#allocation8 + $0x90] sm:$0xff] }
 0x11b   :  { %1921 = vmatprep.subr.bf16.mxu1 %v1920_v30  ;;  %v478_v30 = vld [vmem:[#allocation5 + $0xb28] sm:$0xff]  ;;  %v1750_v33 = vpack.c.bf16 %v469_v25, %v465_v24  ;;  %v1960_v24 = vpack.c.bf16 %v504_v17, %v500_v16  ;;  %v503_v25 = vld [vmem:[#allocation5 + $0xbf0] sm:$0xff]  ;;  %v508_v28 = vld [vmem:[#allocation5 + $0xc18] sm:$0xff] }
 0x11c   :  { %1731 = vmatpush1.bf16.msra.mxu0 %v1730_v36  ;;  %v1752_v35 = vpack.c.bf16 %v478_v30, %v474_v29  ;;  %v473_v36 = vld [vmem:[#allocation5 + $0xb00] sm:$0xff]  ;;  %v512_v29 = vld [vmem:[#allocation5 + $0xc38] sm:$0xff]  ;;  %v118_v30 = vld [vmem:[#allocation2 + $0x20] sm:$0xff]  ;;  %v1962_v32 = vpack.c.bf16 %v503_v25, %v499_v20 }
 0x11d   :  { %1733 = vmatprep.subr.bf16.mxu0 %v1732_v38  ;;  %v467_v38 = vld [vmem:[#allocation5 + $0xad0] sm:$0xff]  ;;  %v1147_v5 = vld [vmem:[#allocation8 + $0xc0] sm:$0xff] }
 0x11e   :  { %1923 = vmatpush1.bf16.msra.mxu1 %v1922_v37  ;;  %v477_v37 = vld [vmem:[#allocation5 + $0xb20] sm:$0xff]  ;;  %v1946_v46 = vpack.c.bf16 %v471_v40, %v467_v38  ;;  %v511_v38 = vld [vmem:[#allocation5 + $0xc30] sm:$0xff] }
 0x11f   :  { %1925 = vmatprep.subr.bf16.mxu1 %v1924_v42  ;;  %v486_v42 = vld [vmem:[#allocation5 + $0xb68] sm:$0xff]  ;;  %v1754_v45 = vpack.c.bf16 %v477_v37, %v473_v36  ;;  %v1964_v36 = vpack.c.bf16 %v512_v29, %v508_v28  ;;  %v507_v37 = vld [vmem:[#allocation5 + $0xc10] sm:$0xff] }
 0x120   :  { %1735 = vmatpush1.bf16.msra.mxu0 %v1734_v48  ;;  %v1756_v47 = vpack.c.bf16 %v486_v42, %v482_v41  ;;  %v481_v48 = vld [vmem:[#allocation5 + $0xb40] sm:$0xff]  ;;  %v1966_v40 = vpack.c.bf16 %v511_v38, %v507_v37  ;;  %v2097_v41 = vld [vmem:[#allocation2 + $0x30] sm:$0xff] }
 0x121   :  { %1737 = vmatprep.subr.bf16.mxu0 %v1736_v50  ;;  %v475_v50 = vld [vmem:[#allocation5 + $0xb10] sm:$0xff]  ;;  %v1151_v29 = vld [vmem:[#allocation8 + $0xe0] sm:$0xff] }
 0x122   :  { %1927 = vmatpush1.bf16.msra.mxu1 %v1926_v49  ;;  %v485_v49 = vld [vmem:[#allocation5 + $0xb60] sm:$0xff]  ;;  %v1950_v58 = vpack.c.bf16 %v479_v52, %v475_v50  ;;  %v1145_v56 = vld [vmem:[#allocation8 + $0xb0] sm:$0xff] }
 0x123   :  { %1929 = vmatprep.subr.bf16.mxu1 %v1928_v54  ;;  %v494_v54 = vld [vmem:[#allocation5 + $0xba8] sm:$0xff]  ;;  %v1758_v57 = vpack.c.bf16 %v485_v49, %v481_v48  ;;  %v1149_v17 = vld [vmem:[#allocation8 + $0xd0] sm:$0xff] }
 0x124   :  { %1739 = vmatpush1.bf16.msra.mxu0 %v1738_v60  ;;  %v1760_v59 = vpack.c.bf16 %v494_v54, %v490_v53  ;;  %v489_v60 = vld [vmem:[#allocation5 + $0xb80] sm:$0xff]  ;;  %v1128_v48 = vld [vmem:[#allocation8 + $0x28] sm:$0xff]  ;;  %v1133_v20 = vld [vmem:[#allocation8 + $0x50] sm:$0xff] }
 0x125   :  { %1741 = vmatprep.subr.bf16.mxu0 %v1740_v62  ;;  %v483_v62 = vld [vmem:[#allocation5 + $0xb50] sm:$0xff]  ;;  %v1171_v50 = vld [vmem:[#allocation8 + $0x180] sm:$0xff] }
 0x126   :  { %1931 = vmatpush1.bf16.msra.mxu1 %v1930_v61  ;;  %v493_v61 = vld [vmem:[#allocation5 + $0xba0] sm:$0xff]  ;;  %v1954_v7 = vpack.c.bf16 %v487_v1, %v483_v62  ;;  %v1156_v54 = vld [vmem:[#allocation8 + $0x108] sm:$0xff]  ;;  %v1173_v62 = vld [vmem:[#allocation8 + $0x190] sm:$0xff] }
 0x127   :  { %1933 = vmatprep.subr.bf16.mxu1 %v1932_v3  ;;  %v502_v3 = vld [vmem:[#allocation5 + $0xbe8] sm:$0xff]  ;;  %v1762_v6 = vpack.c.bf16 %v493_v61, %v489_v60  ;;  %v1130_v60 = vld [vmem:[#allocation8 + $0x38] sm:$0xff] }
 0x128   :  { %1743 = vmatpush1.bf16.msra.mxu0 %v1742_v9  ;;  %v1764_v8 = vpack.c.bf16 %v502_v3, %v498_v2  ;;  %v497_v9 = vld [vmem:[#allocation5 + $0xbc0] sm:$0xff]  ;;  %v1157_v2 = vld [vmem:[#allocation8 + $0x110] sm:$0xff] }
 0x129   :  { %1745 = vmatprep.subr.bf16.mxu0 %v1744_v11  ;;  %v491_v11 = vld [vmem:[#allocation5 + $0xb90] sm:$0xff]  ;;  %v1155_v53 = vld [vmem:[#allocation8 + $0x100] sm:$0xff]  ;;  %v1158_v3 = vld [vmem:[#allocation8 + $0x118] sm:$0xff] }
 0x12a   :  { %1935 = vmatpush1.bf16.msra.mxu1 %v1934_v10  ;;  %v501_v10 = vld [vmem:[#allocation5 + $0xbe0] sm:$0xff]  ;;  %v1958_v19 = vpack.c.bf16 %v495_v13, %v491_v11  ;;  %v2002_v55 = vpack.c.bf16 %v1156_v54, %v1155_v53  ;;  %v2006_v4 = vpack.c.bf16 %v1158_v3, %v1157_v2 }
 0x12b   :  { %1937 = vmatprep.subr.bf16.mxu1 %v1936_v15  ;;  %v1140_v15 = vld [vmem:[#allocation8 + $0x88] sm:$0xff]  ;;  %v1766_v18 = vpack.c.bf16 %v501_v10, %v497_v9  ;;  %v1175_v11 = vld [vmem:[#allocation8 + $0x1a0] sm:$0xff]  ;;  %v1166_v53 = vld [vmem:[#allocation8 + $0x158] sm:$0xff] }
 0x12c   :  { %1747 = vmatpush1.bf16.msra.mxu0 %v1746_v21  ;;  %v1968_v21 = vpack.c.bf16 %v1140_v15, %v1139_v14  ;;  %v1132_v9 = vld [vmem:[#allocation8 + $0x48] sm:$0xff]  ;;  %v1159_v14 = vld [vmem:[#allocation8 + $0x120] sm:$0xff]  ;;  %v1170_v2 = vld [vmem:[#allocation8 + $0x178] sm:$0xff] }
 0x12d   :  { %1749 = vmatprep.subr.bf16.mxu0 %v1748_v23  ;;  %v1124_v23 = vld [vmem:[#allocation8 + $0x8] sm:$0xff]  ;;  %v1163_v38 = vld [vmem:[#allocation8 + $0x140] sm:$0xff] }
 0x12e   :  { %1939 = vmatpush1.bf16.msra.mxu1 %v1938_v22  ;;  %v1123_v22 = vld [vmem:[#allocation8] sm:$0xff]  ;;  %v1160_v15 = vld [vmem:[#allocation8 + $0x128] sm:$0xff] }
 0x12f   :  { %1941 = vmatprep.subr.bf16.mxu1 %v1940_v27  ;;  %v1142_v27 = vld [vmem:[#allocation8 + $0x98] sm:$0xff]  ;;  %v1970_v31 = vpack.c.bf16 %v1124_v23, %v1123_v22  ;;  %v2010_v16 = vpack.c.bf16 %v1160_v15, %v1159_v14  ;;  %v1177_v23 = vld [vmem:[#allocation8 + $0x1b0] sm:$0xff] }
 0x130   :  { %1751 = vmatpush1.bf16.msra.mxu0 %v1750_v33  ;;  %v1972_v33 = vpack.c.bf16 %v1142_v27, %v1141_v26  ;;  %v1161_v26 = vld [vmem:[#allocation8 + $0x130] sm:$0xff]  ;;  %v1162_v27 = vld [vmem:[#allocation8 + $0x138] sm:$0xff] }
 0x131   :  { %1753 = vmatprep.subr.bf16.mxu0 %v1752_v35  ;;  %v1126_v35 = vld [vmem:[#allocation8 + $0x18] sm:$0xff]  ;;  %v2014_v28 = vpack.c.bf16 %v1162_v27, %v1161_v26 }
 0x132   :  { %1943 = vmatpush1.bf16.msra.mxu1 %v1942_v34  ;;  %v1125_v34 = vld [vmem:[#allocation8 + $0x10] sm:$0xff] }
 0x133   :  { %1945 = vmatprep.subr.bf16.mxu1 %v1944_v39  ;;  %v1974_v39 = vpack.c.bf16 %v1126_v35, %v1125_v34  ;;  %v1179_v35 = vld [vmem:[#allocation8 + $0x1c0] sm:$0xff] }
 0x134   :  { %1755 = vmatpush1.bf16.msra.mxu0 %v1754_v45  ;;  %v1144_v45 = vld [vmem:[#allocation8 + $0xa8] sm:$0xff] }
 0x135   :  { %1757 = vmatprep.subr.bf16.mxu0 %v1756_v47  ;;  %v1127_v47 = vld [vmem:[#allocation8 + $0x20] sm:$0xff] }
 0x136   :  { %1947 = vmatpush1.bf16.msra.mxu1 %v1946_v46  ;;  %v1976_v46 = vpack.c.bf16 %v1144_v45, %v1143_v44  ;;  %v1978_v49 = vpack.c.bf16 %v1128_v48, %v1127_v47  ;;  %v1154_v44 = vld [vmem:[#allocation8 + $0xf8] sm:$0xff] }
 0x137   :  { %1949 = vmatprep.subr.bf16.mxu1 %v1948_v51  ;;  %v1172_v51 = vld [vmem:[#allocation8 + $0x188] sm:$0xff]  ;;  %v1138_v47 = vld [vmem:[#allocation8 + $0x78] sm:$0xff] }
 0x138   :  { %1759 = vmatpush1.bf16.msra.mxu0 %v1758_v57  ;;  %v2000_v52 = vpack.c.bf16 %v1172_v51, %v1171_v50  ;;  %v1146_v57 = vld [vmem:[#allocation8 + $0xb8] sm:$0xff] }
 0x139   :  { %1761 = vmatprep.subr.bf16.mxu0 %v1760_v59  ;;  %v1129_v59 = vld [vmem:[#allocation8 + $0x30] sm:$0xff]  ;;  %v1182_v50 = vld [vmem:[#allocation8 + $0x1d8] sm:$0xff] }
 0x13a   :  { %1951 = vmatpush1.bf16.msra.mxu1 %v1950_v58  ;;  %v1980_v58 = vpack.c.bf16 %v1146_v57, %v1145_v56  ;;  %v1982_v61 = vpack.c.bf16 %v1130_v60, %v1129_v59  ;;  %v1184_v56 = vld [vmem:[#allocation8 + $0x1e8] sm:$0xff] }
 0x13b   :  { %1953 = vmatprep.subr.bf16.mxu1 %v1952_v63  ;;  %v1174_v63 = vld [vmem:[#allocation8 + $0x198] sm:$0xff]  ;;  %v1168_v59 = vld [vmem:[#allocation8 + $0x168] sm:$0xff] }
 0x13c   :  { %1763 = vmatpush1.bf16.msra.mxu0 %v1762_v6  ;;  %v2004_v1 = vpack.c.bf16 %v1174_v63, %v1173_v62  ;;  %v1148_v6 = vld [vmem:[#allocation8 + $0xc8] sm:$0xff]  ;;  %v1186_v62 = vld [vmem:[#allocation8 + $0x1f8] sm:$0xff] }
 0x13d   :  { %1765 = vmatprep.subr.bf16.mxu0 %v1764_v8  ;;  %v1131_v8 = vld [vmem:[#allocation8 + $0x40] sm:$0xff] }
 0x13e   :  { %1955 = vmatpush1.bf16.msra.mxu1 %v1954_v7  ;;  %v1984_v7 = vpack.c.bf16 %v1148_v6, %v1147_v5  ;;  %v1986_v10 = vpack.c.bf16 %v1132_v9, %v1131_v8 }
 0x13f   :  { %1957 = vmatprep.subr.bf16.mxu1 %v1956_v12  ;;  %v1176_v12 = vld [vmem:[#allocation8 + $0x1a8] sm:$0xff] }
 0x140   :  { %1767 = vmatpush1.bf16.msra.mxu0 %v1766_v18  ;;  %v2008_v13 = vpack.c.bf16 %v1176_v12, %v1175_v11  ;;  %v1150_v18 = vld [vmem:[#allocation8 + $0xd8] sm:$0xff] }
 0x141   :  { %1969 = vmatprep.subr.bf16.mxu0 %v1968_v21  ;;  %v1134_v21 = vld [vmem:[#allocation8 + $0x58] sm:$0xff] }
 0x142   :  { %1959 = vmatpush1.bf16.msra.mxu1 %v1958_v19  ;;  %v1988_v19 = vpack.c.bf16 %v1150_v18, %v1149_v17  ;;  %v1990_v22 = vpack.c.bf16 %v1134_v21, %v1133_v20 }
 0x143   :  { %1961 = vmatprep.subr.bf16.mxu1 %v1960_v24  ;;  %746 = vmatmul.mubr.f32.vlgmr.msra.gmra.mrb[0].mxu0 %v118_v30  ;;  %v1178_v24 = vld [vmem:[#allocation8 + $0x1b8] sm:$0xff] }
 0x144   :  { %1971 = vmatpush3.bf16.msra.mxu0 %v1970_v31  ;;  %v2012_v25 = vpack.c.bf16 %v1178_v24, %v1177_v23 }
 0x145   :  { %1973 = vmatprep.subr.bf16.mxu0 %v1972_v33  ;;  %v1136_v33 = vld [vmem:[#allocation8 + $0x68] sm:$0xff] }
 0x146   :  { %1963 = vmatpush1.bf16.msra.mxu1 %v1962_v32  ;;  %v1135_v32 = vld [vmem:[#allocation8 + $0x60] sm:$0xff] }
 0x147   :  { %1965 = vmatprep.subr.bf16.mxu1 %v1964_v36  ;;  %v1994_v34 = vpack.c.bf16 %v1136_v33, %v1135_v32  ;;  %v1180_v36 = vld [vmem:[#allocation8 + $0x1c8] sm:$0xff] }
 0x148   :  { %1975 = vmatpush3.bf16.msra.mxu0 %v1974_v39  ;;  %v2016_v37 = vpack.c.bf16 %v1180_v36, %v1179_v35  ;;  %v1164_v39 = vld [vmem:[#allocation8 + $0x148] sm:$0xff] }
 0x149   :  { %1030 = vmatmul.mubr.f32.vlgmr.msra.gmra.mrb[2].mxu1 %v118_v30  ;;  %1977 = vmatprep.subr.bf16.mxu0 %v1976_v46  ;;  %v1152_v30 = vld [vmem:[#allocation8 + $0xe8] sm:$0xff]  ;;  %v1137_v46 = vld [vmem:[#allocation8 + $0x70] sm:$0xff] }
 0x14a   :  { %1967 = vmatpush1.bf16.msra.mxu1 %v1966_v40  ;;  %1100 = vmatprep.mubr.f32.mxu1 %v2295_v0  ;;  %v1992_v31 = vpack.c.bf16 %v1152_v30, %v1151_v29  ;;  %v2018_v40 = vpack.c.bf16 %v1164_v39, %v1163_v38  ;;  %v1998_v48 = vpack.c.bf16 %v1138_v47, %v1137_v46  ;;  %v1338_v39 = vld [vmem:[#allocation11] sm:$0xff]  ;;  %v1341_v46 = vld [vmem:[#allocation11 + $0x18] sm:$0xff] }
 0x14b   :  { %2001 = vmatprep.subr.bf16.mxu1 %v2000_v52  ;;  %v1165_v52 = vld [vmem:[#allocation8 + $0x150] sm:$0xff] }
 0x14c   :  { %1979 = vmatpush3.bf16.msra.mxu0 %v1978_v49  ;;  %v1181_v49 = vld [vmem:[#allocation8 + $0x1d0] sm:$0xff]  ;;  %v2022_v54 = vpack.c.bf16 %v1166_v53, %v1165_v52  ;;  %v1345_v52 = vld [vmem:[#allocation11 + $0x38] sm:$0xff] }
 0x14d   :  { %1981 = vmatprep.subr.bf16.mxu0 %v1980_v58  ;;  %v2020_v51 = vpack.c.bf16 %v1182_v50, %v1181_v49  ;;  %v1167_v58 = vld [vmem:[#allocation8 + $0x160] sm:$0xff]  ;;  %v1343_v49 = vld [vmem:[#allocation11 + $0x28] sm:$0xff] }
 0x14e   :  { %v2026_v60 = vpack.c.bf16 %v1168_v59, %v1167_v58  ;;  %v1349_v58 = vld [vmem:[#allocation11 + $0x58] sm:$0xff] }
 0x150   :  { %1983 = vmatpush3.bf16.msra.mxu0 %v1982_v61  ;;  %v1185_v61 = vld [vmem:[#allocation8 + $0x1f0] sm:$0xff] }
 0x151   :  { %1451 = vmatmul.mubr.msk.f32.vlgmr.msra.gmra.mrb[2].mxu1 %vm535_vm0, %v2097_v41  ;;  %1985 = vmatprep.subr.bf16.mxu0 %v1984_v7  ;;  %v1153_v41 = vld [vmem:[#allocation8 + $0xf0] sm:$0xff]  ;;  %v2028_v63 = vpack.c.bf16 %v1186_v62, %v1185_v61  ;;  %v513_v7 = vld [vmem:[#allocation7] sm:$0xf] }
 0x152   :  { %2003 = vmatpush3.bf16.msra.mxu1 %v2002_v55  ;;  %v1996_v45 = vpack.c.bf16 %v1154_v44, %v1153_v41  ;;  %v1183_v55 = vld [vmem:[#allocation8 + $0x1e0] sm:$0xff]  ;;  %v2296_v44 = vmov 0.0|0.0   ;;  %v1351_v61 = vld [vmem:[#allocation11 + $0x68] sm:$0xff] }
 0x153   :  { %2005 = vmatprep.subr.bf16.mxu1 %v2004_v1  ;;  %v2024_v57 = vpack.c.bf16 %v1184_v56, %v1183_v55  ;;  %v1169_v1 = vld [vmem:[#allocation8 + $0x170] sm:$0xff] }
 0x154   :  { %1987 = vmatpush3.bf16.msra.mxu0 %v1986_v10  ;;  %v2030_v3 = vpack.c.bf16 %v1170_v2, %v1169_v1  ;;  %v1347_v55 = vld [vmem:[#allocation11 + $0x48] sm:$0xff]  ;;  %v1353_v1 = vld [vmem:[#allocation11 + $0x78] sm:$0xff] }
 0x155   :  { %1989 = vmatprep.subr.bf16.mxu0 %v1988_v19 }
 0x156   :  { %2007 = vmatpush3.bf16.msra.mxu1 %v2006_v4  ;;  %v515_v4 = vlaneseq }
 0x157   :  { %2009 = vmatprep.subr.bf16.mxu1 %v2008_v13 }
 0x158   :  { %1991 = vmatpush3.bf16.msra.mxu0 %v1990_v22  ;;  %v516_v5 = vshrl.u32 %v515_v4, 7 }
 0x159   :  { %1993 = vmatprep.subr.bf16.mxu0 %v1992_v31 }
 0x15a   :  { %2011 = vmatpush3.bf16.msra.mxu1 %v2010_v16  ;;  %v517_v6 = vsub.s32 0, %v516_v5  ;;  %v521_v8 = vsub.s32 1, %v516_v5  ;;  %v525_v19 = vsub.s32 2, %v516_v5  ;;  %v529_v20 = vsub.s32 3, %v516_v5 }
 0x15b   :  { %2013 = vmatprep.subr.bf16.mxu1 %v2012_v25 }
 0x15c   :  { %v2427_v42 = vpop.f32.mrb[0].mxu1  ;;  %1995 = vmatpush3.bf16.msra.mxu0 %v1994_v34  ;;  %v518_v9 = vrot.slane %v513_v7, %v517_v6  ;;  %v522_v10 = vrot.slane %v513_v7, %v521_v8  ;;  %v526_v21 = vrot.slane %v513_v7, %v525_v19  ;;  %v530_v22 = vrot.slane %v513_v7, %v529_v20  ;;  %v1452_v6 = vld [vmem:[#allocation10] ss:$0 sm:$0xff] }
 0x15d   :  { %v2429_v43 = vpop.f32.mrb[1].mxu1  ;;  %1997 = vmatprep.subr.bf16.mxu0 %v1996_v45  ;;  %v1340_v45 = vld [vmem:[#allocation11 + $0x10] sm:$0xff] }
 0x15e   :  { %2015 = vmatpush3.bf16.msra.mxu1 %v2014_v28  ;;  %v2036_v47 = vpack.c.bf16 %v1341_v46, %v1340_v45 }
 0x15f   :  { %2017 = vmatprep.subr.bf16.mxu1 %v2016_v37 }
 0x160   :  { %1999 = vmatpush3.bf16.msra.mxu0 %v1998_v48  ;;  %v1342_v48 = vld [vmem:[#allocation11 + $0x20] sm:$0xff] }
 0x161   :  { %2032 = vmatprep.subr.bf16.mxu0 %v2296_v44  ;;  %v2039_v50 = vpack.c.bf16 %v1343_v49, %v1342_v48 }
 0x162   :  { %2019 = vmatpush3.bf16.msra.mxu1 %v2018_v40  ;;  %v1339_v40 = vld [vmem:[#allocation11 + $0x8] sm:$0xff] }
 0x163   :  { %2021 = vmatprep.subr.bf16.mxu1 %v2020_v51  ;;  %v2033_v41 = vpack.c.bf16 %v1339_v40, %v1338_v39  ;;  %v1344_v51 = vld [vmem:[#allocation11 + $0x30] sm:$0xff] }
 0x164   :  { %v2042_v53 = vpack.c.bf16 %v1345_v52, %v1344_v51 }
 0x166   :  { %2023 = vmatpush3.bf16.msra.mxu1 %v2022_v54  ;;  %v1346_v54 = vld [vmem:[#allocation11 + $0x40] sm:$0xff] }
 0x167   :  { %2025 = vmatprep.subr.bf16.mxu1 %v2024_v57  ;;  %v2045_v56 = vpack.c.bf16 %v1347_v55, %v1346_v54  ;;  %v1348_v57 = vld [vmem:[#allocation11 + $0x50] sm:$0xff] }
 0x168   :  { %v2048_v59 = vpack.c.bf16 %v1349_v58, %v1348_v57 }
 0x16a   :  { %2027 = vmatpush3.bf16.msra.mxu1 %v2026_v60  ;;  %v1350_v60 = vld [vmem:[#allocation11 + $0x60] sm:$0xff] }
 0x16b   :  { %2029 = vmatprep.subr.bf16.mxu1 %v2028_v63  ;;  %v2051_v62 = vpack.c.bf16 %v1351_v61, %v1350_v60  ;;  %v1352_v63 = vld [vmem:[#allocation11 + $0x70] sm:$0xff] }
 0x16c   :  { %v2054_v2 = vpack.c.bf16 %v1353_v1, %v1352_v63 }
 0x16e   :  { %2031 = vmatpush3.bf16.msra.mxu1 %v2030_v3 }
 0x216   :  { %v747_v11 = vpop.f32.mrb[0].mxu0 }
 0x217   :  { %v2056_v12 = vadd.f32 %v747_v11, %v518_v9  ;;  %v749_v13 = vpop.f32.mrb[1].mxu0 }
 0x218   :  { %v2058_v14 = vadd.f32 %v749_v13, %v522_v10 }
 0x219   :  { %v2057_v15 = vadd.f32 %v2056_v12, %v2427_v42 }
 0x21a   :  { %v2059_v16 = vadd.f32 %v2058_v14, %v2429_v43 }
 0x21b   :  { %v1107_v17 = vmul.f32 0.5, %v2057_v15 }
 0x21c   :  { %v1108_v18 = vmul.f32 0.5, %v2059_v16  ;;  %v1453_v16 = vld [vmem:[#allocation13] ss:$0 sm:$0xff] }
 0x21d   :  { %2087 = vtanh.f32 %v1107_v17 }
 0x21e   :  { %2089 = vtanh.f32 %v1108_v18 }
 0x224   :  { %v1102_v23 = vpop.f32.mrb[2].mxu1 }
 0x225   :  { %v2060_v24 = vadd.f32 %v1102_v23, %v526_v21  ;;  %v1104_v25 = vpop.f32.mrb[3].mxu1 }
 0x226   :  { %v2061_v26 = vadd.f32 %v1104_v25, %v530_v22 }
 0x227   :  { %v1109_v27 = vmul.f32 0.5, %v2060_v24  ;;  %v2088_v28 = vpop.eup %2087 }
 0x228   :  { %v1110_v29 = vmul.f32 0.5, %v2061_v26  ;;  %v2090_v30 = vpop.eup %2089  ;;  %v1115_v31 = vmul.f32 0.5, %v2088_v28 }
 0x229   :  { %2091 = vtanh.f32 %v1109_v27  ;;  %v1116_v42 = vmul.f32 0.5, %v2090_v30 }
 0x22a   :  { %2093 = vtanh.f32 %v1110_v29  ;;  %v1119_v32 = vadd.f32 0.5, %v1115_v31 }
 0x22b   :  { %v1120_v43 = vadd.f32 0.5, %v1116_v42 }
 0x22d   :  { %1258 = vmatprep.mubr.f32.mxu0 %v1120_v43 }
 0x22e   :  { %1259 = vmatmul.mubr.f32.vlgmr.msra.gmra.mrb[2].mxu0 %v1119_v32 }
 0x22f   :  { %2034 = vmatpush3.bf16.msra.mxu0 %v2033_v41  ;;  %1573 = vmatprep.mubr.msk.f32.mxu0 %vm2297_vm1, %v2295_v0 }
 0x230   :  { %2035 = vmatprep.subr.bf16.mxu0 %v2296_v44 }
 0x233   :  { %v2092_v33 = vpop.eup %2091  ;;  %2037 = vmatpush3.bf16.msra.mxu0 %v2036_v47 }
 0x234   :  { %v2094_v34 = vpop.eup %2093  ;;  %v1117_v35 = vmul.f32 0.5, %v2092_v33  ;;  %2038 = vmatprep.subr.bf16.mxu0 %v2296_v44 }
 0x235   :  { %v1118_v36 = vmul.f32 0.5, %v2094_v34 }
 0x236   :  { %v1121_v38 = vadd.f32 0.5, %v1117_v35 }
 0x237   :  { %v1122_v37 = vadd.f32 0.5, %v1118_v36  ;;  %2040 = vmatpush3.bf16.msra.mxu0 %v2039_v50 }
 0x238   :  { %2041 = vmatprep.subr.bf16.mxu0 %v2296_v44 }
 0x239   :  { %1328 = vmatprep.mubr.f32.mxu1 %v1122_v37 }
 0x23a   :  { %1329 = vmatmul.mubr.f32.vlgmr.msra.gmra.mrb[4].mxu1 %v1121_v38 }
 0x23b   :  { %2043 = vmatpush3.bf16.msra.mxu0 %v2042_v53 }
 0x23c   :  { %2044 = vmatprep.subr.bf16.mxu0 %v2296_v44 }
 0x23f   :  { %2046 = vmatpush3.bf16.msra.mxu0 %v2045_v56 }
 0x240   :  { %2047 = vmatprep.subr.bf16.mxu0 %v2296_v44 }
 0x243   :  { %2049 = vmatpush3.bf16.msra.mxu0 %v2048_v59 }
 0x244   :  { %2050 = vmatprep.subr.bf16.mxu0 %v2296_v44 }
 0x247   :  { %2052 = vmatpush3.bf16.msra.mxu0 %v2051_v62 }
 0x248   :  { %2053 = vmatprep.subr.bf16.mxu0 %v2296_v44 }
 0x24b   :  { %2055 = vmatpush3.bf16.msra.mxu0 %v2054_v2 }
 0x301   :  { %v1486_v3 = vpop.f32.mrb[2].mxu0 }
 0x302   :  { %v1487_v4 = vpop.f32.mrb[3].mxu0 }
 0x303   :  { %v1488_v5 = vadd.f32 %v1487_v4, %v1486_v3 }
 0x305   :  { %v1261_v9 = vadd.f32 %v1488_v5, %v1452_v6 }
 0x30d   :  { %v1521_v7 = vpop.f32.mrb[4].mxu1 }
 0x30e   :  { %v1522_v8 = vpop.f32.mrb[5].mxu1 }
 0x30f   :  { %v1523_v10 = vadd.f32 %v1522_v8, %v1521_v7 }
 0x311   :  { %v1331_v11 = vadd.f32 %v1523_v10, %v1261_v9 }
 0x313   :  { %v1334_v12 = vmul.f32 0.5, %v1331_v11 }
 0x315   :  { %2095 = vtanh.f32 %v1334_v12 }
 0x31f   :  { %v2096_v13 = vpop.eup %2095 }
 0x320   :  { %v1336_v14 = vmul.f32 0.5, %v2096_v13 }
 0x322   :  { %v1337_v15 = vadd.f32 0.5, %v1336_v14 }
 0x324   :  { %1574 = vmatmul.mubr.f32.vlgmr.msra.gmra.mrb[4].mxu0 %v1337_v15 }
 0x3f7   :  { %v1427_v17 = vpop.f32.mrb[4].mxu0 }
 0x3f8   :  { %v1428_v0 = vadd.f32 %v1453_v16, %v1427_v17  ;;  %v1575_v18 = vpop.f32.mrb[5].mxu0 }
 0x3fa   :  { %1431 = vst [vmem:[#allocation14] sm:$0xff] %v1428_v0 }
 0x3fb   :  { %2263 = shalt.err (!%p2260_p4)
}
 0x3fc   :  { %s2264_s15 = scalar_lea.hbm %s2453_s7, 128 }
 0x3fd   :  { %p2265_p5 = scmp.ne.s32.totalorder %s2453_s7, %s2264_s15  ;;  %p2268_p6 = scmp.lt.u32.totalorder %s2264_s15, %s2453_s7 }
 0x3ff   :  { %p2270_p7 = pnand %p2268_p6, %p2265_p5 }
 0x401   :  { %2273 = shalt.err (!%p2270_p7)
}
 0x402   :  { %1441 = dma.vmem_to_hbm [thread:$0]  %s1439_s13, 128, %s2453_s7, [#allocation4]  }
 0x403   :  { %2282 = dma.done.wait [#allocation4], 128  }
 0x404   :  { %2283 = vsyncadd [#allocation4], 4294967168 }
 0x405   :  { %1445 = vsyncpa [#allocation3], 1 }
 0x406   :  { %1446 = vsyncpa [#allocation6], 1 }
 0x407   :  { %1447 = vsyncpa [#allocation9], 1 }
 0x408   :  { %1448 = vsyncpa [#allocation12], 1 }
 0x409   :  { %1449 = vsyncpa [#allocation4], 1 }

</bundles_post_ra>
